<compile_context>
chip_gen: v7x
topology: tpu7x:2x2x1
jax: 0.10.0
libtpu: 0.0.40
codegen_flags: <defaults>
</compile_context>

<pallas_src>
import jax
import jax.numpy as jnp
from jax import lax
from jax.experimental import pallas as pl
from jax.experimental.pallas import tpu as pltpu

IN_FEATURES = 196608   # 3 * 32 * 32 * 64 (from the CIFAR tutorial flatten)
OUT_FEATURES = 10


def _linear_kernel(x_ref, w_ref, o_ref):
    """One grid step: partial (N, OUT) = x_tile (N, tk) @ w_tile (OUT, tk).T.

    The output block is resident across the inner (reduction) grid axis, so we
    accumulate straight into o_ref (float32) — no scratch needed.
    """
    k = pl.program_id(1)

    partial = lax.dot_general(
        x_ref[...], w_ref[...],
        dimension_numbers=(((1,), (1,)), ((), ())),   # contract last dims
        preferred_element_type=jnp.float32,
    )

    @pl.when(k == 0)
    def _():
        o_ref[...] = partial

    @pl.when(k != 0)
    def _():
        o_ref[...] += partial


def wu_linear(x, w, b, *, tk=24576, k_splits=2):
    """Forward pass of `Wu`: out = x @ w.T + b.

    x: (N, K) float32
    w: (OUT, K) float32   -- torch nn.Linear layout, streamed lane-dense
    b: (OUT,)  float32
    """
    n, k_dim = x.shape
    out_dim, k_w = w.shape
    assert k_w == k_dim
    assert k_dim % (k_splits * tk) == 0, "K must divide k_splits * tk"
    k_steps = k_dim // (k_splits * tk)   # reduction steps per split (= 4)

    flops = 2 * n * k_dim * out_dim
    bytes_accessed = 4 * (x.size + w.size + b.size + n * out_dim)

    partials = pl.pallas_call(
        _linear_kernel,
        out_shape=jax.ShapeDtypeStruct((k_splits, n, out_dim), jnp.float32),
        grid_spec=pltpu.PrefetchScalarGridSpec(
            num_scalar_prefetch=0,
            grid=(k_splits, k_steps),
            in_specs=[
                # x tile: (N, tk), walk K blocks; split p owns blocks
                # [p*k_steps, (p+1)*k_steps).
                pl.BlockSpec((n, tk), lambda p, k: (0, p * k_steps + k)),
                # weight tile: (OUT, tk) lane-dense (last dim = tk, mult. of 128)
                pl.BlockSpec((out_dim, tk), lambda p, k: (0, p * k_steps + k)),
            ],
            # Each split writes its own (N, OUT) partial; leading dim squeezed.
            out_specs=pl.BlockSpec((None, n, out_dim), lambda p, k: (p, 0, 0)),
        ),
        compiler_params=pltpu.CompilerParams(
            # split axis shards across TensorCores on v7x; K is a reduction.
            dimension_semantics=("parallel", "arbitrary"),
        ),
        cost_estimate=pl.CostEstimate(
            flops=flops, transcendentals=0, bytes_accessed=bytes_accessed),
    )(x, w)

    # Reduce the per-core partial sums and add the bias (tiny op, done in XLA).
    return partials.sum(axis=0) + b[None, :]


if __name__ == "__main__":
    key = jax.random.PRNGKey(0)
    k_x, k_w, k_b = jax.random.split(key, 3)

    batch = 2
    # PyTorch-style init: uniform(-1/sqrt(in), 1/sqrt(in)), torch (OUT, IN) layout.
    bound = 1.0 / jnp.sqrt(jnp.float32(IN_FEATURES))
    w = jax.random.uniform(
        k_w, (OUT_FEATURES, IN_FEATURES), jnp.float32, -bound, bound
    )
    b = jax.random.uniform(k_b, (OUT_FEATURES,), jnp.float32, -bound, bound)

    x = jax.random.normal(k_x, (batch, IN_FEATURES), jnp.float32)

    out = wu_linear(x, w, b)
    out = jax.block_until_ready(out)

    # Reference check (what torch's Linear computes: x @ W.T + b).
    ref = x @ w.T + b[None, :]
    assert out.shape == (batch, OUT_FEATURES)
    assert jnp.allclose(out, ref, atol=1e-3, rtol=1e-3)

    print("KERNEL_OK")
</pallas_src>

<mosaic_0001>
module attributes {stable_mosaic.version = 11 : i64} {
  func.func @_linear_kernel(%arg0: i32, %arg1: i32, %arg2: memref<2x24576xf32, #tpu.memory_space<vmem>>, %arg3: memref<10x24576xf32, #tpu.memory_space<vmem>>, %arg4: memref<1x2x10xf32, #tpu.memory_space<vmem>>) attributes {dimension_semantics = [#tpu.dimension_semantics<parallel>, #tpu.dimension_semantics<arbitrary>], iteration_bounds = array<i64: 2, 4>, scalar_prefetch = 0 : i64, scratch_operands = 0 : i64, tpu.core_type = #tpu.core_type<tc>, window_params = [{transform_indices = @transform_0, window_bounds = array<i64: 2, 24576>}, {transform_indices = @transform_1, window_bounds = array<i64: 10, 24576>}, {transform_indices = @transform_2, window_bounds = array<i64: 1, 2, 10>}]} {
    %c0 = arith.constant 0 : index
    %c0_0 = arith.constant 0 : index
    %0 = vector.load %arg2[%c0, %c0_0] : memref<2x24576xf32, #tpu.memory_space<vmem>>, vector<2x24576xf32>
    %c0_1 = arith.constant 0 : index
    %c0_2 = arith.constant 0 : index
    %1 = vector.load %arg3[%c0_1, %c0_2] : memref<10x24576xf32, #tpu.memory_space<vmem>>, vector<10x24576xf32>
    %cst = arith.constant dense<0.000000e+00> : vector<2x10xf32>
    %2 = tpu.matmul %0, %1, %cst {dimension_numbers = #tpu.dot_dimension_numbers<[1], [1], [0], [0], [0, 0, 1, 0], [], []>} : vector<2x24576xf32>, vector<10x24576xf32>, vector<2x10xf32> -> vector<2x10xf32>
    %c0_i32 = arith.constant 0 : i32
    %3 = arith.cmpi eq, %arg1, %c0_i32 : i32
    %4 = arith.extui %3 : i1 to i32
    %c0_i32_3 = arith.constant 0 : i32
    %5 = arith.cmpi ne, %4, %c0_i32_3 : i32
    scf.if %5 {
      %c0_6 = arith.constant 0 : index
      %c0_7 = arith.constant 0 : index
      %c0_8 = arith.constant 0 : index
      %9 = vector.load %arg4[%c0_6, %c0_7, %c0_8] : memref<1x2x10xf32, #tpu.memory_space<vmem>>, vector<1x2x10xf32>
      %10 = vector.shape_cast %9 : vector<1x2x10xf32> to vector<2x10xf32>
      %11 = vector.shape_cast %2 : vector<2x10xf32> to vector<1x2x10xf32>
      tpu.vector_store %arg4[%c0_6, %c0_7, %c0_8], %11 {strides = array<i32>} : memref<1x2x10xf32, #tpu.memory_space<vmem>>, vector<1x2x10xf32>,
    } else {
    }
    %c0_i32_4 = arith.constant 0 : i32
    %6 = arith.cmpi ne, %arg1, %c0_i32_4 : i32
    %7 = arith.extui %6 : i1 to i32
    %c0_i32_5 = arith.constant 0 : i32
    %8 = arith.cmpi ne, %7, %c0_i32_5 : i32
    scf.if %8 {
      %c0_6 = arith.constant 0 : index
      %c0_7 = arith.constant 0 : index
      %c0_8 = arith.constant 0 : index
      %9 = vector.load %arg4[%c0_6, %c0_7, %c0_8] : memref<1x2x10xf32, #tpu.memory_space<vmem>>, vector<1x2x10xf32>
      %10 = vector.shape_cast %9 : vector<1x2x10xf32> to vector<2x10xf32>
      %11 = arith.addf %10, %2 : vector<2x10xf32>
      %c0_9 = arith.constant 0 : index
      %c0_10 = arith.constant 0 : index
      %c0_11 = arith.constant 0 : index
      %12 = vector.load %arg4[%c0_9, %c0_10, %c0_11] : memref<1x2x10xf32, #tpu.memory_space<vmem>>, vector<1x2x10xf32>
      %13 = vector.shape_cast %12 : vector<1x2x10xf32> to vector<2x10xf32>
      %14 = vector.shape_cast %11 : vector<2x10xf32> to vector<1x2x10xf32>
      tpu.vector_store %arg4[%c0_9, %c0_10, %c0_11], %14 {strides = array<i32>} : memref<1x2x10xf32, #tpu.memory_space<vmem>>, vector<1x2x10xf32>,
    } else {
    }
    return
  }
  func.func @transform_0(%arg0: i32, %arg1: i32) -> (i32, i32) {
    %c4_i32 = arith.constant 4 : i32
    %0 = arith.muli %arg0, %c4_i32 : i32
    %1 = arith.addi %0, %arg1 : i32
    %c0_i32 = arith.constant 0 : i32
    %c0_i32_0 = arith.constant 0 : i32
    return %c0_i32, %1 : i32, i32
  }
  func.func @transform_1(%arg0: i32, %arg1: i32) -> (i32, i32) {
    %c4_i32 = arith.constant 4 : i32
    %0 = arith.muli %arg0, %c4_i32 : i32
    %1 = arith.addi %0, %arg1 : i32
    %c0_i32 = arith.constant 0 : i32
    %c0_i32_0 = arith.constant 0 : i32
    return %c0_i32, %1 : i32, i32
  }
  func.func @transform_2(%arg0: i32, %arg1: i32) -> (i32, i32, i32) {
    %c0_i32 = arith.constant 0 : i32
    %c0_i32_0 = arith.constant 0 : i32
    %c0_i32_1 = arith.constant 0 : i32
    return %arg0, %c0_i32, %c0_i32_0 : i32, i32, i32
  }
}

</mosaic_0001>

<bundles_post_ra>
// kernel: tpu_custom_call.1
= control target key start
LH: loop header
LB: loop body
LE: loop exit
PB: predicated region body
PF: predicated region fallthrough
CT: control target
= control target key end

     0   :  { %7 = vsyncpa [#allocation3], 0  ;;  %s10350_s0 = inlined_call_operand.hbm [shape: f32[2,196608], index: 0, kind: input, shape index: {}]   ;;  %s10351_s1 = inlined_call_operand.hbm [shape: f32[10,196608], index: 1, kind: input, shape index: {}]   ;;  %s10352_s2 = inlined_call_operand.hbm [shape: f32[2,2,10], index: 2, kind: output, shape index: {}]  }
   0x1   :  { %9 = vsyncpa [#allocation3 + $0x1], 0 }
   0x2   :  { %10 = vsyncpa [#allocation6], 0 }
   0x3   :  { %12 = vsyncpa [#allocation6 + $0x1], 0 }
   0x4   :  { %13 = vsyncpa [#allocation4], 0 }
   0x5   :  { %15 = vsyncpa [#allocation4 + $0x1], 0  ;;  %s9542_s9 = smov 0   ;;  %s9544_s10 = smov 0  }
   0x6   :  { %s9546_s11 = smov 0   ;;  %s9548_s12 = smov 0  }
   0x7   :  { %s9550_s13 = smov 0   ;;  %s9552_s14 = smov 0  }
   0x8   :  { %s9554_s15 = smov 0   ;;  %s9556_s16 = smov 0  }
   0x9   :  { %s9558_s17 = smov 0   ;;  %s9560_s18 = smov 0  }
   0xa   :  { %s9562_s19 = smov 0  }
   0xb LB: > { %10359 = sst [smem:[#allocation11_spill]] %s9510_s17  ;;  %s8574_s20 = sadd.s32 4294967295, %s9518_s19   ;;  %s9518_s19 = sphi %s9562_s19, %s21_s19   ;;  %s9514_s18 = sphi %s9560_s18, %s10375_s18   ;;  %s9510_s17 = sphi %s9558_s17, %s10374_s17   ;;  %s9506_s16 = sphi %s9556_s16, %s10373_s16   ;;  %s9502_s15 = sphi %s9554_s15, %s10372_s15   ;;  %s9498_s14 = sphi %s9552_s14, %s10381_s14   ;;  %s9494_s13 = sphi %s9550_s13, %s10380_s13   ;;  %s9490_s12 = sphi %s9548_s12, %s10379_s12   ;;  %s9486_s11 = sphi %s9546_s11, %s10378_s11   ;;  %s9482_s10 = sphi %s9544_s10, %s10377_s10   ;;  %s9478_s9 = sphi %s9542_s9, %s10376_s9  }
   0xc   : > { %10360 = sst [smem:[#allocation12_spill]] %s9514_s18  ;;  %s8575_s21 = sadd.s32 4294967294, %s9518_s19  }
   0xd   : > { %s30_s22 = sadd.s32 1, %s9510_s17  ;;  %s33_s23 = sadd.s32 1, %s9514_s18 }
   0xe   : > { %p31_p0 = scmp.ge.s32.totalorder %s30_s22, 4  ;;  %s8576_s24 = sshll.u32 %s9514_s18, 2 }
   0xf   : > { %s9601_s25 = sadd.s32 %s9510_s17, %s8576_s24  ;;  %s44_s26 = sadd.s32 1, %s9498_s14 }
  0x10   : > { %s10383_s22 = smov (%p31_p0, %s30_s22), 0  ;;  %s10385_s23 = smov (!%p31_p0, %s33_s23), %s9514_s18 }
  0x11   : > { %10361 = sst [smem:[#allocation13_spill]] %s10383_s22  ;;  %p51_p1 = scmp.ne.s32.totalorder %s9498_s14, %s9494_s13 }
  0x12   : > { %p52_p2 = scmp.eq.s32.totalorder %s9518_s19, 0  ;;  %p35_p3 = scmp.ge.s32.totalorder %s10385_s23, 2 }
  0x13   : > { %p57_p4 = scmp.ne.s32.totalorder %s9494_s13, %s9490_s12  ;;  %p58_p6 = scmp.eq.s32.totalorder %s8574_s20, 0 }
  0x14   : > { %p9611_p5 = por %p52_p2, %p51_p1  ;;  %s10387_s23 = smov (%p35_p3, %s10385_s23), 0 }
  0x15   : > { %10363 = sst [smem:[#allocation14_spill]] %s10387_s23  ;;  %p9617_p7 = por %p58_p6, %p57_p4 }
  0x16   : > { %s100_s29 = sadd.s32 1, %s9486_s11  ;;  %s8577_s30 = sshll.u32 %s10387_s23, 2 }
  0x17   : > { %s10364_s28 = scalar_select %p9617_p7, 1, 0 }
  0x18   : > { %s97_s3 = ssub.s32 %s9514_s18, %s10387_s23  ;;  %s40_s4 = sadd.s32 %s8577_s30, %s10383_s22 }
  0x19   : > { %p98_p8 = scmp.eq.s32.totalorder %s97_s3, 0  ;;  %s41_s5 = ssub.s32 %s9601_s25, %s40_s4 }
  0x1a   : > { %p110_p9 = scmp.ne.s32.totalorder %s9486_s11, %s9482_s10  ;;  %p42_p10 = scmp.eq.s32.totalorder %s41_s5, 0 }
  0x1b   : > { %p111_p11 = scmp.eq.s32.totalorder %s8574_s20, 7  ;;  %p116_p13 = scmp.ne.s32.totalorder %s9482_s10, %s9478_s9 }
  0x1c   : > { %s9630_s6 = scalar_select %p98_p8, %s9486_s11, %s100_s29  }
  0x1d   : > { %s9633_s7 = scalar_select %p42_p10, %s9498_s14, %s44_s26  }
  0x1e   : > { %p9635_p12 = por %p111_p11, %p110_p9  ;;  %p117_p0 = scmp.eq.s32.totalorder %s8575_s21, 7 }
  0x1f   : > { %p9190_p1 = scmp.lt.s32.totalorder %s9518_s19, 8  ;;  %s9645_s12 = sand.u32 1, %s9498_s14  }
  0x20   : > { %s10365_s8 = scalar_select %p9635_p12, 1, 0 }
  0x21   : > { %p9647_p2 = por %p117_p0, %p116_p13  ;;  %s9169_s20 = smul.u32 384, %s9645_s12 }
  0x22   : > { %p9654_p3 = pnand %p9190_p1, %p9611_p5  ;;  %s8594_s29 = smul.u32 6144, %s9601_s25 }
  0x23   : > { %s10366_s24 = scalar_select %p9647_p2, 1, 0 }
  0x24   : > { %s9662_s3 = scalar_lea.hbm %s10350_s0, %s8594_s29  ;;  %s141_s4 = scalar_lea.vmem [#allocation2], %s9169_s20 }
  0x25   : > { %s151_s5 = sshll.u32 %s141_s4, 4  ;;  %s9170_s27 = smul.u32 3072, %s9645_s12  ;;  %s9664_s5 = int_to_ptr.vmem [resolvable:$true] %s151_s5 }
  0x26   : > { %s138_s23 = scalar_lea.sflag [#allocation3], %s9645_s12  ;;  %s9332_s22 = scalar_lea.hbm %s9662_s3, 6144 }
  0x27   : > { %p9333_p4 = scmp.ne.s32.totalorder %s9662_s3, %s9332_s22  ;;  %p9334_p5 = pneg %p9654_p3 }
  0x28   : > { %s9337_s30 = scalar_lea.hbm %s10350_s0, 49152  ;;  %p9338_p9 = scmp.lt.u32.totalorder %s9662_s3, %s10350_s0 }
  0x29   : > { %p9335_p6 = pnand %p9334_p5, %p9333_p4  ;;  %p9339_p10 = scmp.lt.u32.totalorder %s9337_s30, %s9332_s22 }
  0x2a   : > { %p9341_p13 = scmp.lt.u32.totalorder %s9332_s22, %s9662_s3 }
  0x2b   : > { %p9336_p8 = pneg %p9335_p6  ;;  %p9340_p11 = por %p9339_p10, %p9338_p9 }
  0x2d   : > { %p9342_p0 = por %p9341_p13, %p9340_p11 }
  0x2f   : > { %p9343_p1 = pnand %p9342_p0, %p9336_p8 }
  0x31   : > { %9346 = shalt.err (!%p9343_p1)
}
  0x32   : > { %s9347_s20 = scalar_lea.vmem %s9664_s5, 6144  ;;  %s9520_s4 = smov [#allocation2]  }
  0x33   : > { %p9348_p4 = scmp.ne.s32.totalorder %s9664_s5, %s9347_s20  ;;  %s9352_s29 = sshll.u32 %s9520_s4, 4  ;;  %s9353_s29 = int_to_ptr.vmem [resolvable:$false] %s9352_s29 }
  0x34   : > { %s9354_s17 = scalar_lea.vmem %s9353_s29, 12288  ;;  %p9355_p12 = scmp.lt.s32.totalorder %s9664_s5, %s9353_s29 }
  0x35   : > { %p9350_p6 = pnand %p9348_p4, %p9334_p5  ;;  %p9356_p9 = scmp.lt.s32.totalorder %s9354_s17, %s9347_s20 }
  0x37   : > { %p9351_p2 = pneg %p9350_p6  ;;  %p9357_p10 = por %p9356_p9, %p9355_p12 }
  0x39   : > { %p9358_p11 = pnand %p9357_p10, %p9351_p2 }
  0x3b   : > { %9361 = shalt.err (!%p9358_p11)
}
  0x3c   : > { %9182 = dma.hbm_to_vmem [thread:$0]  (!%p9654_p3), %s9662_s3, 6144, %s9664_s5, %s138_s23  }
  0x3d   : > { %s8595_s18 = smul.u32 24576, %s9601_s25  ;;  %p8586_p8 = scmp.ge.s32.totalorder %s9518_s19, 1 }
  0x3e   : > { %p179_p13 = scmp.lt.s32.totalorder %s9518_s19, 9  ;;  %s162_s20 = scalar_lea.vmem [#allocation5], %s9170_s27 }
  0x3f   : > { %s9699_s30 = scalar_lea.hbm %s10351_s1, %s8595_s18  ;;  %s171_s4 = sshll.u32 %s162_s20, 4  ;;  %s9707_s4 = int_to_ptr.vmem [resolvable:$true] %s171_s4 }
  0x40   : > { %p9703_p12 = pnand %p8586_p8, %p179_p13  ;;  %s159_s23 = scalar_lea.sflag [#allocation6], %s9645_s12 }
  0x41   : > { %s9362_s25 = scalar_lea.hbm %s9699_s30, 49152  ;;  %s9367_s17 = scalar_lea.hbm %s10351_s1, 393216 }
  0x42   : > { %p9363_p2 = scmp.ne.s32.totalorder %s9699_s30, %s9362_s25  ;;  %p9368_p4 = scmp.lt.u32.totalorder %s9699_s30, %s10351_s1 }
  0x43   : > { %p9369_p6 = scmp.lt.u32.totalorder %s9367_s17, %s9362_s25  ;;  %p9371_p10 = scmp.lt.u32.totalorder %s9362_s25, %s9699_s30 }
  0x44   : > { %p9365_p0 = pnand %p9363_p2, %p9334_p5 }
  0x45   : > { %p9370_p9 = por %p9369_p6, %p9368_p4 }
  0x46   : > { %p9366_p1 = pneg %p9365_p0 }
  0x47   : > { %p9372_p11 = por %p9371_p10, %p9370_p9 }
  0x49   : > { %p9373_p8 = pnand %p9372_p11, %p9366_p1 }
  0x4b   : > { %9376 = shalt.err (!%p9373_p8)
}
  0x4c   : > { %s9377_s22 = scalar_lea.vmem %s9707_s4, 49152  ;;  %s9521_s21 = smov [#allocation5]  }
  0x4d   : > { %p9378_p13 = scmp.ne.s32.totalorder %s9707_s4, %s9377_s22  ;;  %s9382_s20 = sshll.u32 %s9521_s21, 4  ;;  %s9383_s20 = int_to_ptr.vmem [resolvable:$false] %s9382_s20 }
  0x4e   : > { %s9384_s3 = scalar_lea.vmem %s9383_s20, 98304  ;;  %p9385_p7 = scmp.lt.s32.totalorder %s9707_s4, %s9383_s20 }
  0x4f   : > { %p9380_p2 = pnand %p9378_p13, %p9334_p5  ;;  %p9386_p4 = scmp.lt.s32.totalorder %s9384_s3, %s9377_s22 }
  0x51   : > { %p9381_p0 = pneg %p9380_p2  ;;  %p9387_p6 = por %p9386_p4, %p9385_p7 }
  0x53   : > { %p9388_p9 = pnand %p9387_p6, %p9381_p0 }
  0x55   : > { %9391 = shalt.err (!%p9388_p9)
}
  0x56   : > { %s9522_s25 = smov 196608   ;;  %s9523_s5 = smov 24576  }
  0x57   : > { %s9524_s17 = smov 1536   ;;  %183 = sbr.rel (%p9703_p12) target bundleno = 739 (0x2e3), region = 28 }
  0x58   : > { %9185 = dma.hbm_to_vmem [thread:$0]  (!%p9654_p3), %s9699_s30, 49152, %s9707_s4, %s159_s23, %s9522_s25, %s9523_s5, %s9524_s17  }
  0x59   : > { %s185_s18 = sand.u32 (!%p9703_p12), 1, %s9494_s13   ;;  %p10369_p7 = scmp.ne.s32.totalorder (!%p9703_p12), %s10364_s28, 0 }
  0x5a   : > { %s9171_s27 = smul.u32 (!%p9703_p12), 384, %s185_s18  ;;  %s186_s22 = scalar_lea.sflag (!%p9703_p12), [#allocation3], %s185_s18 }
  0x5c   : > { %s9738_s21 = scalar_lea.vmem (!%p9703_p12), [#allocation2], %s9171_s27 }
  0x5e   : > { %9465 = dma.done.wait (%p10369_p7), %s186_s22, 6144  }
  0x5f   : > { %9467 = vsyncadd (%p10369_p7), %s186_s22, 4294961152  ;;  %s9172_s20 = smul.u32 3072, %s185_s18  ;;  %s195_s26 = scalar_lea.sflag [#allocation6], %s185_s18 }
  0x61   : > { %s9744_s12 = scalar_lea.vmem [#allocation5], %s9172_s20 }
  0x62   : > { %9469 = dma.done.wait (%p10369_p7), %s195_s26, 49152  }
  0x63   : > { %9471 = vsyncadd (%p10369_p7), %s195_s26, 4294918144  ;;  %s221_s30 = sand.u32 1, %s9482_s10   ;;  %v714_v0 = vlaneseq  ;;  %v9525_v1 = vmov 1983009808   ;;  %v279_v6 = vld [vmem:[%s9744_s12 + $0x8] sm:$0xff]  ;;  %v278_v11 = vld [vmem:[%s9744_s12] sm:$0xff] }
  0x64   : > { %s9753_s4 = sshll.u32 %s221_s30, 1  ;;  %v712_v2 = vunpack.c.l.s4 %v9525_v1  ;;  %v471_v7 = vld [vmem:[%s9744_s12 + $0x608] sm:$0x3]  ;;  %v470_v12 = vld [vmem:[%s9744_s12 + $0x600] sm:$0x3]  ;;  %v281_v22 = vld [vmem:[%s9744_s12 + $0x18] sm:$0xff] }
  0x65   : > { %v715_v3 = vshrl.u32 %v714_v0, 7  ;;  %v375_v8 = vld [vmem:[%s9744_s12 + $0x308] sm:$0xff]  ;;  %v8596_v9 = vpack.c.bf16 %v471_v7, %v279_v6  ;;  %v8598_v14 = vpack.c.bf16 %v470_v12, %v278_v11  ;;  %v374_v15 = vld [vmem:[%s9744_s12 + $0x300] sm:$0xff]  ;;  %v473_v23 = vld [vmem:[%s9744_s12 + $0x618] sm:$0x3]  ;;  %s223_s28 = scalar_lea.vmem [#allocation7], %s9753_s4 }
  0x66   : > { %v713_v4 = vunpack.c.0.s8 %v712_v2  ;;  %v567_v10 = vld [vmem:[%s9744_s12 + $0x908] sm:$0x3]  ;;  %v566_v16 = vld [vmem:[%s9744_s12 + $0x900] sm:$0x3]  ;;  %v8600_v26 = vpack.c.bf16 %v473_v23, %v281_v22  ;;  %v377_v27 = vld [vmem:[%s9744_s12 + $0x318] sm:$0xff]  ;;  %p8588_p3 = scmp.ne.s32.totalorder %s9502_s15, 0 }
  0x67   : > { %v8788_v13 = vpack.c.bf16 %v567_v10, %v375_v8  ;;  %v230_v17 = vld [vmem:[%s9738_s21] sm:$0xff]  ;;  %8597 = vmatprep.subr.bf16.mxu1 %v8596_v9  ;;  %v8790_v18 = vpack.c.bf16 %v566_v16, %v374_v15  ;;  %v569_v28 = vld [vmem:[%s9744_s12 + $0x918] sm:$0x3]  ;;  %v280_v31 = vld [vmem:[%s9744_s12 + $0x10] sm:$0xff]  ;;  %vm8442_vm0 = vcmask (!%p8588_p3), 74752  }
  0x68   : > { %v9755_v5 = vsub.s32 %v713_v4, %v715_v3  ;;  %v710_v19 = vcombine.high %v230_v17, %v230_v17  ;;  %v254_v21 = vld [vmem:[%s9738_s21 + $0xc0] sm:$0xff]  ;;  %8599 = vmatpush1.bf16.xpose.msra.mxu1 %v8598_v14  ;;  %v8792_v30 = vpack.c.bf16 %v569_v28, %v377_v27  ;;  %v472_v32 = vld [vmem:[%s9744_s12 + $0x610] sm:$0x3]  ;;  %v283_v38 = vld [vmem:[%s9744_s12 + $0x28] sm:$0xff] }
  0x69   : > { %8789 = vmatprep.subr.bf16.mxu0 %v8788_v13  ;;  %v1118_v24 = vcombine.high %v254_v21, %v254_v21  ;;  %8601 = vmatprep.subr.bf16.mxu1 %v8600_v26  ;;  %v376_v35 = vld [vmem:[%s9744_s12 + $0x310] sm:$0xff]  ;;  %v475_v39 = vld [vmem:[%s9744_s12 + $0x628] sm:$0x3]  ;;  %v8602_v40 = vpack.c.bf16 %v472_v32, %v280_v31  ;;  %v282_v50 = vld [vmem:[%s9744_s12 + $0x20] sm:$0xff] }
  0x6a   : > { %v717_v20 = vrot.slane %v230_v17, %v9755_v5  ;;  %v1125_v25 = vrot.slane %v254_v21, %v9755_v5  ;;  %8791 = vmatpush1.bf16.xpose.msra.mxu0 %v8790_v18  ;;  %v724_v33 = vrot.slane %v710_v19, %v9755_v5  ;;  %v568_v36 = vld [vmem:[%s9744_s12 + $0x910] sm:$0x3]  ;;  %v379_v41 = vld [vmem:[%s9744_s12 + $0x328] sm:$0xff]  ;;  %v8604_v46 = vpack.c.bf16 %v475_v39, %v283_v38  ;;  %v474_v51 = vld [vmem:[%s9744_s12 + $0x620] sm:$0x3] }
  0x6b   : > { %v1132_v37 = vrot.slane %v1118_v24, %v9755_v5  ;;  %8793 = vmatprep.subr.bf16.mxu0 %v8792_v30  ;;  %v571_v42 = vld [vmem:[%s9744_s12 + $0x928] sm:$0x3]  ;;  %v8794_v43 = vpack.c.bf16 %v568_v36, %v376_v35  ;;  %v378_v53 = vld [vmem:[%s9744_s12 + $0x320] sm:$0xff]  ;;  %v285_v56 = vld [vmem:[%s9744_s12 + $0x38] sm:$0xff]  ;;  %v8606_v58 = vpack.c.bf16 %v474_v51, %v282_v50 }
  0x6c   : > { %v725_v29 = vcombine.high %v717_v20, %v717_v20  ;;  %v1133_v34 = vcombine.high %v1125_v25, %v1125_v25  ;;  %v726_v44 = vcombine.high %v724_v33, %v724_v33  ;;  %v231_v47 = vld [vmem:[%s9738_s21 + $0x8] sm:$0xff]  ;;  %v8796_v48 = vpack.c.bf16 %v571_v42, %v379_v41  ;;  %v570_v54 = vld [vmem:[%s9744_s12 + $0x920] sm:$0x3]  ;;  %v477_v57 = vld [vmem:[%s9744_s12 + $0x638] sm:$0x3] }
  0x6d   : > { %v1134_v45 = vcombine.high %v1132_v37, %v1132_v37  ;;  %v255_v49 = vld [vmem:[%s9738_s21 + $0xc8] sm:$0xff]  ;;  %v734_v52 = vrot.slane %v231_v47, %v9755_v5  ;;  %v381_v59 = vld [vmem:[%s9744_s12 + $0x338] sm:$0xff]  ;;  %v8798_v61 = vpack.c.bf16 %v570_v54, %v378_v53  ;;  %v727_v63 = vcombine.high %v231_v47, %v231_v47  ;;  %v284_v4 = vld [vmem:[%s9744_s12 + $0x30] sm:$0xff] }
  0x6e   : > { %1782 = vmatprep.mubr.f32.mxu1 %v725_v29  ;;  %5142 = vmatprep.mubr.f32.mxu0 %v1133_v34  ;;  %v1142_v55 = vrot.slane %v255_v49, %v9755_v5  ;;  %v573_v60 = vld [vmem:[%s9744_s12 + $0x938] sm:$0x3]  ;;  %v8608_v1 = vpack.c.bf16 %v477_v57, %v285_v56  ;;  %v1135_v2 = vcombine.high %v255_v49, %v255_v49  ;;  %v476_v6 = vld [vmem:[%s9744_s12 + $0x630] sm:$0x3]  ;;  %v287_v11 = vld [vmem:[%s9744_s12 + $0x48] sm:$0xff] }
  0x6f   : > { %1783 = vmatmul.mubr.f32.vlgmr.msra.gmra.mrb[0].mxu1 %v717_v20  ;;  %v742_v62 = vcombine.high %v734_v52, %v734_v52  ;;  %v8800_v3 = vpack.c.bf16 %v573_v60, %v381_v59  ;;  %v741_v7 = vrot.slane %v727_v63, %v9755_v5  ;;  %v380_v8 = vld [vmem:[%s9744_s12 + $0x330] sm:$0xff]  ;;  %v479_v12 = vld [vmem:[%s9744_s12 + $0x648] sm:$0x3]  ;;  %v8610_v13 = vpack.c.bf16 %v476_v6, %v284_v4  ;;  %v286_v23 = vld [vmem:[%s9744_s12 + $0x40] sm:$0xff] }
  0x70   : > { %8603 = vmatpush1.bf16.xpose.msra.mxu1 %v8602_v40  ;;  %1852 = vmatprep.mubr.f32.mxu1 %v726_v44  ;;  %v1150_v0 = vcombine.high %v1142_v55, %v1142_v55  ;;  %v572_v9 = vld [vmem:[%s9744_s12 + $0x930] sm:$0x3]  ;;  %v1149_v10 = vrot.slane %v1135_v2, %v9755_v5  ;;  %v383_v14 = vld [vmem:[%s9744_s12 + $0x348] sm:$0xff]  ;;  %v8612_v19 = vpack.c.bf16 %v479_v12, %v287_v11  ;;  %v478_v24 = vld [vmem:[%s9744_s12 + $0x640] sm:$0x3] }
  0x71   : > { %5143 = vmatmul.mubr.f32.vlgmr.msra.gmra.mrb[0].mxu0 %v1125_v25  ;;  %8605 = vmatprep.subr.bf16.mxu1 %v8604_v46  ;;  %v575_v15 = vld [vmem:[%s9744_s12 + $0x948] sm:$0x3]  ;;  %v8802_v16 = vpack.c.bf16 %v572_v9, %v380_v8  ;;  %v743_v17 = vcombine.high %v741_v7, %v741_v7  ;;  %v232_v20 = vld [vmem:[%s9738_s21 + $0x10] sm:$0xff]  ;;  %v382_v26 = vld [vmem:[%s9744_s12 + $0x340] sm:$0xff]  ;;  %v8614_v31 = vpack.c.bf16 %v478_v24, %v286_v23 }
  0x72   : > { %8795 = vmatpush1.bf16.xpose.msra.mxu0 %v8794_v43  ;;  %5212 = vmatprep.mubr.f32.mxu0 %v1134_v45  ;;  %v1151_v18 = vcombine.high %v1149_v10, %v1149_v10  ;;  %v8804_v21 = vpack.c.bf16 %v575_v15, %v383_v14  ;;  %v256_v22 = vld [vmem:[%s9738_s21 + $0xd0] sm:$0xff]  ;;  %v751_v25 = vrot.slane %v232_v20, %v9755_v5  ;;  %v574_v27 = vld [vmem:[%s9744_s12 + $0x940] sm:$0x3]  ;;  %v289_v29 = vld [vmem:[%s9744_s12 + $0x58] sm:$0xff] }
  0x73   : > { %8797 = vmatprep.subr.bf16.mxu0 %v8796_v48  ;;  %v1159_v28 = vrot.slane %v256_v22, %v9755_v5  ;;  %v481_v30 = vld [vmem:[%s9744_s12 + $0x658] sm:$0x3]  ;;  %v8806_v34 = vpack.c.bf16 %v574_v27, %v382_v26  ;;  %v744_v36 = vcombine.high %v232_v20, %v232_v20  ;;  %v1152_v39 = vcombine.high %v256_v22, %v256_v22  ;;  %v288_v41 = vld [vmem:[%s9744_s12 + $0x50] sm:$0xff]  ;;  %v291_v47 = vld [vmem:[%s9744_s12 + $0x68] sm:$0xff] }
  0x74   : > { %v385_v32 = vld [vmem:[%s9744_s12 + $0x358] sm:$0xff]  ;;  %v759_v35 = vcombine.high %v751_v25, %v751_v25  ;;  %v8616_v38 = vpack.c.bf16 %v481_v30, %v289_v29  ;;  %v480_v42 = vld [vmem:[%s9744_s12 + $0x650] sm:$0x3]  ;;  %v483_v48 = vld [vmem:[%s9744_s12 + $0x668] sm:$0x3] }
  0x75   : > { %v758_v43 = vrot.slane %v744_v36, %v9755_v5  ;;  %v384_v44 = vld [vmem:[%s9744_s12 + $0x350] sm:$0xff]  ;;  %v1166_v46 = vrot.slane %v1152_v39, %v9755_v5  ;;  %v8618_v49 = vpack.c.bf16 %v480_v42, %v288_v41  ;;  %v387_v50 = vld [vmem:[%s9744_s12 + $0x368] sm:$0xff]  ;;  %v233_v56 = vld [vmem:[%s9738_s21 + $0x18] sm:$0xff] }
  0x76   : > { %v576_v45 = vld [vmem:[%s9744_s12 + $0x950] sm:$0x3]  ;;  %v579_v51 = vld [vmem:[%s9744_s12 + $0x968] sm:$0x3]  ;;  %v290_v59 = vld [vmem:[%s9744_s12 + $0x60] sm:$0xff]  ;;  %v761_v9 = vcombine.high %v233_v56, %v233_v56 }
  0x77   : > { %1853 = vmatmul.mubr.f32.vlgmr.msra.gmra.mrb[0].mxu1 %v724_v33  ;;  %v577_v33 = vld [vmem:[%s9744_s12 + $0x958] sm:$0x3]  ;;  %v760_v53 = vcombine.high %v758_v43, %v758_v43  ;;  %v1168_v54 = vcombine.high %v1166_v46, %v1166_v46  ;;  %v8812_v57 = vpack.c.bf16 %v579_v51, %v387_v50  ;;  %v482_v60 = vld [vmem:[%s9744_s12 + $0x660] sm:$0x3]  ;;  %v292_v14 = vld [vmem:[%s9744_s12 + $0x70] sm:$0xff] }
  0x78   : > { %8607 = vmatpush1.bf16.xpose.msra.mxu1 %v8606_v58  ;;  %1922 = vmatprep.mubr.f32.mxu1 %v742_v62  ;;  %v8808_v40 = vpack.c.bf16 %v577_v33, %v385_v32  ;;  %v257_v58 = vld [vmem:[%s9738_s21 + $0xd8] sm:$0xff]  ;;  %v386_v62 = vld [vmem:[%s9744_s12 + $0x360] sm:$0xff]  ;;  %v484_v15 = vld [vmem:[%s9744_s12 + $0x670] sm:$0x3] }
  0x79   : > { %5213 = vmatmul.mubr.f32.vlgmr.msra.gmra.mrb[0].mxu0 %v1132_v37  ;;  %8609 = vmatprep.subr.bf16.mxu1 %v8608_v1  ;;  %v1167_v37 = vcombine.high %v1159_v28, %v1159_v28  ;;  %v578_v63 = vld [vmem:[%s9744_s12 + $0x960] sm:$0x3]  ;;  %v293_v1 = vld [vmem:[%s9744_s12 + $0x78] sm:$0xff]  ;;  %v1169_v12 = vcombine.high %v257_v58, %v257_v58  ;;  %v295_v20 = vld [vmem:[%s9744_s12 + $0x88] sm:$0xff]  ;;  %v8626_v22 = vpack.c.bf16 %v484_v15, %v292_v14 }
  0x7a   : > { %8799 = vmatpush1.bf16.xpose.msra.mxu0 %v8798_v61  ;;  %5282 = vmatprep.mubr.f32.mxu0 %v1150_v0  ;;  %v768_v61 = vrot.slane %v233_v56, %v9755_v5  ;;  %v1176_v0 = vrot.slane %v257_v58, %v9755_v5  ;;  %v485_v2 = vld [vmem:[%s9744_s12 + $0x678] sm:$0x3]  ;;  %v391_v23 = vld [vmem:[%s9744_s12 + $0x388] sm:$0xff]  ;;  %v234_v29 = vld [vmem:[%s9738_s21 + $0x20] sm:$0xff] }
  0x7b   : > { %8801 = vmatprep.subr.bf16.mxu0 %v8800_v3  ;;  %v8622_v3 = vpack.c.bf16 %v482_v60, %v290_v59  ;;  %v389_v4 = vld [vmem:[%s9744_s12 + $0x378] sm:$0xff]  ;;  %v8624_v11 = vpack.c.bf16 %v485_v2, %v293_v1  ;;  %v583_v24 = vld [vmem:[%s9744_s12 + $0x988] sm:$0x3]  ;;  %v294_v32 = vld [vmem:[%s9744_s12 + $0x80] sm:$0xff] }
  0x7c   : > { %v581_v6 = vld [vmem:[%s9744_s12 + $0x978] sm:$0x3]  ;;  %v776_v8 = vcombine.high %v768_v61, %v768_v61  ;;  %v8820_v30 = vpack.c.bf16 %v583_v24, %v391_v23  ;;  %v486_v33 = vld [vmem:[%s9744_s12 + $0x680] sm:$0x3]  ;;  %v296_v50 = vld [vmem:[%s9744_s12 + $0x90] sm:$0xff] }
  0x7d   : > { %v582_v36 = vld [vmem:[%s9744_s12 + $0x980] sm:$0x3]  ;;  %v489_v39 = vld [vmem:[%s9744_s12 + $0x698] sm:$0x3]  ;;  %v488_v51 = vld [vmem:[%s9744_s12 + $0x690] sm:$0x3] }
  0x7e   : > { %v393_v41 = vld [vmem:[%s9744_s12 + $0x398] sm:$0xff]  ;;  %v299_v56 = vld [vmem:[%s9744_s12 + $0xa8] sm:$0xff]  ;;  %v8634_v58 = vpack.c.bf16 %v488_v51, %v296_v50  ;;  %v300_v23 = vld [vmem:[%s9744_s12 + $0xb0] sm:$0xff] }
  0x7f   : > { %1923 = vmatmul.mubr.f32.vlgmr.msra.gmra.mrb[0].mxu1 %v734_v52  ;;  %v8810_v52 = vpack.c.bf16 %v576_v45, %v384_v44  ;;  %v585_v42 = vld [vmem:[%s9744_s12 + $0x998] sm:$0x3]  ;;  %v778_v45 = vcombine.high %v234_v29, %v234_v29  ;;  %v395_v59 = vld [vmem:[%s9744_s12 + $0x3a8] sm:$0xff]  ;;  %v492_v24 = vld [vmem:[%s9744_s12 + $0x6b0] sm:$0x3] }
  0x80   : > { %8611 = vmatpush1.bf16.xpose.msra.mxu1 %v8610_v13  ;;  %1992 = vmatprep.mubr.f32.mxu1 %v743_v17  ;;  %v8816_v13 = vpack.c.bf16 %v581_v6, %v389_v4  ;;  %v388_v17 = vld [vmem:[%s9744_s12 + $0x370] sm:$0xff]  ;;  %v587_v60 = vld [vmem:[%s9744_s12 + $0x9a8] sm:$0x3]  ;;  %v298_v4 = vld [vmem:[%s9744_s12 + $0xa0] sm:$0xff] }
  0x81   : > { %5283 = vmatmul.mubr.f32.vlgmr.msra.gmra.mrb[0].mxu0 %v1142_v55  ;;  %8613 = vmatprep.subr.bf16.mxu1 %v8612_v19  ;;  %v8620_v55 = vpack.c.bf16 %v483_v48, %v291_v47  ;;  %v1183_v19 = vrot.slane %v1169_v12, %v9755_v5  ;;  %v235_v1 = vld [vmem:[%s9738_s21 + $0x28] sm:$0xff]  ;;  %v8828_v2 = vpack.c.bf16 %v587_v60, %v395_v59  ;;  %v490_v6 = vld [vmem:[%s9744_s12 + $0x6a0] sm:$0x3]  ;;  %v493_v12 = vld [vmem:[%s9744_s12 + $0x6b8] sm:$0x3] }
  0x82   : > { %8803 = vmatpush1.bf16.xpose.msra.mxu0 %v8802_v16  ;;  %5352 = vmatprep.mubr.f32.mxu0 %v1151_v18  ;;  %v775_v16 = vrot.slane %v761_v9, %v9755_v5  ;;  %v580_v18 = vld [vmem:[%s9744_s12 + $0x970] sm:$0x3]  ;;  %v586_v9 = vld [vmem:[%s9744_s12 + $0x9a0] sm:$0x3]  ;;  %v397_v14 = vld [vmem:[%s9744_s12 + $0x3b8] sm:$0xff] }
  0x83   : > { %8805 = vmatprep.subr.bf16.mxu0 %v8804_v21  ;;  %v487_v21 = vld [vmem:[%s9744_s12 + $0x688] sm:$0x3]  ;;  %v1185_v27 = vcombine.high %v1183_v19, %v1183_v19  ;;  %v589_v15 = vld [vmem:[%s9744_s12 + $0x9b8] sm:$0x3]  ;;  %v304_v59 = vld [vmem:[%s9744_s12 + $0xd0] sm:$0xff] }
  0x84   : > { %v777_v26 = vcombine.high %v775_v16, %v775_v16  ;;  %v401_v50 = vld [vmem:[%s9744_s12 + $0x3d8] sm:$0xff]  ;;  %v496_v60 = vld [vmem:[%s9744_s12 + $0x6d0] sm:$0x3] }
  0x85   : > { %v593_v51 = vld [vmem:[%s9744_s12 + $0x9d8] sm:$0x3] }
  0x87   : > { %1993 = vmatmul.mubr.f32.vlgmr.msra.gmra.mrb[0].mxu1 %v741_v7  ;;  %v8814_v7 = vpack.c.bf16 %v578_v63, %v386_v62 }
  0x88   : > { %8615 = vmatpush1.bf16.xpose.msra.mxu1 %v8614_v31  ;;  %2062 = vmatprep.mubr.f32.mxu1 %v759_v35  ;;  %v258_v31 = vld [vmem:[%s9738_s21 + $0xe0] sm:$0xff] }
  0x89   : > { %5353 = vmatmul.mubr.f32.vlgmr.msra.gmra.mrb[0].mxu0 %v1149_v10  ;;  %8617 = vmatprep.subr.bf16.mxu1 %v8616_v38  ;;  %v1184_v10 = vcombine.high %v1176_v0, %v1176_v0  ;;  %v390_v35 = vld [vmem:[%s9744_s12 + $0x380] sm:$0xff]  ;;  %v297_v38 = vld [vmem:[%s9744_s12 + $0x98] sm:$0xff]  ;;  %v1186_v48 = vcombine.high %v258_v31, %v258_v31 }
  0x8a   : > { %8807 = vmatpush1.bf16.xpose.msra.mxu0 %v8806_v34  ;;  %5422 = vmatprep.mubr.f32.mxu0 %v1167_v37  ;;  %v785_v34 = vrot.slane %v234_v29, %v9755_v5  ;;  %v1193_v37 = vrot.slane %v258_v31, %v9755_v5  ;;  %v8632_v47 = vpack.c.bf16 %v489_v39, %v297_v38  ;;  %v303_v29 = vld [vmem:[%s9744_s12 + $0xc8] sm:$0xff]  ;;  %v236_v38 = vld [vmem:[%s9738_s21 + $0x30] sm:$0xff] }
  0x8b   : > { %8809 = vmatprep.subr.bf16.mxu0 %v8808_v40  ;;  %v8630_v40 = vpack.c.bf16 %v486_v33, %v294_v32  ;;  %v8642_v31 = vpack.c.bf16 %v492_v24, %v300_v23  ;;  %v399_v32 = vld [vmem:[%s9744_s12 + $0x3c8] sm:$0xff]  ;;  %v405_v23 = vld [vmem:[%s9744_s12 + $0x3f8] sm:$0xff] }
  0x8c   : > { %v793_v44 = vcombine.high %v785_v34, %v785_v34  ;;  %v591_v33 = vld [vmem:[%s9744_s12 + $0x9c8] sm:$0x3]  ;;  %v597_v24 = vld [vmem:[%s9744_s12 + $0x9f8] sm:$0x3] }
  0x8d   : > { %v8836_v39 = vpack.c.bf16 %v591_v33, %v399_v32  ;;  %v308_v32 = vld [vmem:[%s9744_s12 + $0xf0] sm:$0xff] }
  0x8e   : > { %v500_v33 = vld [vmem:[%s9744_s12 + $0x6f0] sm:$0x3] }
  0x8f   : > { %2063 = vmatmul.mubr.f32.vlgmr.msra.gmra.mrb[0].mxu1 %v751_v25  ;;  %v8818_v25 = vpack.c.bf16 %v580_v18, %v388_v17  ;;  %v795_v18 = vcombine.high %v235_v1, %v235_v1 }
  0x90   : > { %8619 = vmatpush1.bf16.xpose.msra.mxu1 %v8618_v49  ;;  %2132 = vmatprep.mubr.f32.mxu1 %v760_v53  ;;  %v8824_v49 = vpack.c.bf16 %v585_v42, %v393_v41  ;;  %v392_v53 = vld [vmem:[%s9744_s12 + $0x390] sm:$0xff]  ;;  %v302_v41 = vld [vmem:[%s9744_s12 + $0xc0] sm:$0xff] }
  0x91   : > { %5423 = vmatmul.mubr.f32.vlgmr.msra.gmra.mrb[0].mxu0 %v1159_v28  ;;  %8621 = vmatprep.subr.bf16.mxu1 %v8620_v55  ;;  %v8628_v28 = vpack.c.bf16 %v487_v21, %v295_v20  ;;  %v1200_v55 = vrot.slane %v1186_v48, %v9755_v5  ;;  %v494_v42 = vld [vmem:[%s9744_s12 + $0x6c0] sm:$0x3]  ;;  %v497_v48 = vld [vmem:[%s9744_s12 + $0x6d8] sm:$0x3] }
  0x92   : > { %8811 = vmatpush1.bf16.xpose.msra.mxu0 %v8810_v52  ;;  %5492 = vmatprep.mubr.f32.mxu0 %v1168_v54  ;;  %v792_v52 = vrot.slane %v778_v45, %v9755_v5  ;;  %v584_v54 = vld [vmem:[%s9744_s12 + $0x990] sm:$0x3]  ;;  %v590_v45 = vld [vmem:[%s9744_s12 + $0x9c0] sm:$0x3] }
  0x93   : > { %8813 = vmatprep.subr.bf16.mxu0 %v8812_v57  ;;  %v491_v57 = vld [vmem:[%s9744_s12 + $0x6a8] sm:$0x3]  ;;  %v1202_v63 = vcombine.high %v1200_v55, %v1200_v55 }
  0x94   : > { %v794_v62 = vcombine.high %v792_v52, %v792_v52 }
  0x97   : > { %2133 = vmatmul.mubr.f32.vlgmr.msra.gmra.mrb[0].mxu1 %v758_v43  ;;  %v8822_v43 = vpack.c.bf16 %v582_v36, %v390_v35 }
  0x98   : > { %8623 = vmatpush1.bf16.xpose.msra.mxu1 %v8622_v3  ;;  %2202 = vmatprep.mubr.f32.mxu1 %v776_v8  ;;  %v259_v3 = vld [vmem:[%s9738_s21 + $0xe8] sm:$0xff]  ;;  %v394_v8 = vld [vmem:[%s9744_s12 + $0x3a0] sm:$0xff] }
  0x99   : > { %5493 = vmatmul.mubr.f32.vlgmr.msra.gmra.mrb[0].mxu0 %v1166_v46  ;;  %8625 = vmatprep.subr.bf16.mxu1 %v8624_v11  ;;  %v1201_v46 = vcombine.high %v1193_v37, %v1193_v37  ;;  %v301_v11 = vld [vmem:[%s9744_s12 + $0xb8] sm:$0xff]  ;;  %v1203_v21 = vcombine.high %v259_v3, %v259_v3 }
  0x9a   : > { %8815 = vmatpush1.bf16.xpose.msra.mxu0 %v8814_v7  ;;  %5562 = vmatprep.mubr.f32.mxu0 %v1184_v10  ;;  %v802_v7 = vrot.slane %v235_v1, %v9755_v5  ;;  %v1210_v10 = vrot.slane %v259_v3, %v9755_v5  ;;  %v8640_v20 = vpack.c.bf16 %v493_v12, %v301_v11  ;;  %v307_v1 = vld [vmem:[%s9744_s12 + $0xe8] sm:$0xff]  ;;  %v237_v11 = vld [vmem:[%s9738_s21 + $0x38] sm:$0xff] }
  0x9b   : > { %8817 = vmatprep.subr.bf16.mxu0 %v8816_v13  ;;  %v8638_v13 = vpack.c.bf16 %v490_v6, %v298_v4  ;;  %v8650_v3 = vpack.c.bf16 %v496_v60, %v304_v59  ;;  %v403_v4 = vld [vmem:[%s9744_s12 + $0x3e8] sm:$0xff]  ;;  %v409_v59 = vld [vmem:[%s9744_s12 + $0x418] sm:$0xff] }
  0x9c   : > { %v810_v17 = vcombine.high %v802_v7, %v802_v7  ;;  %v595_v6 = vld [vmem:[%s9744_s12 + $0x9e8] sm:$0x3]  ;;  %v601_v60 = vld [vmem:[%s9744_s12 + $0xa18] sm:$0x3] }
  0x9d   : > { %v8844_v12 = vpack.c.bf16 %v595_v6, %v403_v4  ;;  %v312_v4 = vld [vmem:[%s9744_s12 + $0x110] sm:$0xff] }
  0x9e   : > { %v504_v6 = vld [vmem:[%s9744_s12 + $0x710] sm:$0x3] }
  0x9f   : > { %2203 = vmatmul.mubr.f32.vlgmr.msra.gmra.mrb[0].mxu1 %v768_v61  ;;  %v8826_v61 = vpack.c.bf16 %v584_v54, %v392_v53  ;;  %v812_v54 = vcombine.high %v236_v38, %v236_v38 }
  0xa0   : > { %8627 = vmatpush1.bf16.xpose.msra.mxu1 %v8626_v22  ;;  %2272 = vmatprep.mubr.f32.mxu1 %v777_v26  ;;  %v8832_v22 = vpack.c.bf16 %v589_v15, %v397_v14  ;;  %v396_v26 = vld [vmem:[%s9744_s12 + $0x3b0] sm:$0xff]  ;;  %v306_v14 = vld [vmem:[%s9744_s12 + $0xe0] sm:$0xff] }
  0xa1   : > { %5563 = vmatmul.mubr.f32.vlgmr.msra.gmra.mrb[0].mxu0 %v1176_v0  ;;  %8629 = vmatprep.subr.bf16.mxu1 %v8628_v28  ;;  %v8636_v0 = vpack.c.bf16 %v491_v57, %v299_v56  ;;  %v1217_v28 = vrot.slane %v1203_v21, %v9755_v5  ;;  %v498_v15 = vld [vmem:[%s9744_s12 + $0x6e0] sm:$0x3]  ;;  %v501_v21 = vld [vmem:[%s9744_s12 + $0x6f8] sm:$0x3] }
  0xa2   : > { %8819 = vmatpush1.bf16.xpose.msra.mxu0 %v8818_v25  ;;  %5632 = vmatprep.mubr.f32.mxu0 %v1185_v27  ;;  %v809_v25 = vrot.slane %v795_v18, %v9755_v5  ;;  %v588_v27 = vld [vmem:[%s9744_s12 + $0x9b0] sm:$0x3]  ;;  %v594_v18 = vld [vmem:[%s9744_s12 + $0x9e0] sm:$0x3] }
  0xa3   : > { %8821 = vmatprep.subr.bf16.mxu0 %v8820_v30  ;;  %v495_v30 = vld [vmem:[%s9744_s12 + $0x6c8] sm:$0x3]  ;;  %v1219_v36 = vcombine.high %v1217_v28, %v1217_v28 }
  0xa4   : > { %v811_v35 = vcombine.high %v809_v25, %v809_v25 }
  0xa7   : > { %2273 = vmatmul.mubr.f32.vlgmr.msra.gmra.mrb[0].mxu1 %v775_v16  ;;  %v8830_v16 = vpack.c.bf16 %v586_v9, %v394_v8 }
  0xa8   : > { %8631 = vmatpush1.bf16.xpose.msra.mxu1 %v8630_v40  ;;  %2342 = vmatprep.mubr.f32.mxu1 %v793_v44  ;;  %v260_v40 = vld [vmem:[%s9738_s21 + $0xf0] sm:$0xff]  ;;  %v398_v44 = vld [vmem:[%s9744_s12 + $0x3c0] sm:$0xff] }
  0xa9   : > { %5633 = vmatmul.mubr.f32.vlgmr.msra.gmra.mrb[0].mxu0 %v1183_v19  ;;  %8633 = vmatprep.subr.bf16.mxu1 %v8632_v47  ;;  %v1218_v19 = vcombine.high %v1210_v10, %v1210_v10  ;;  %v305_v47 = vld [vmem:[%s9744_s12 + $0xd8] sm:$0xff]  ;;  %v1220_v57 = vcombine.high %v260_v40, %v260_v40 }
  0xaa   : > { %8823 = vmatpush1.bf16.xpose.msra.mxu0 %v8822_v43  ;;  %5702 = vmatprep.mubr.f32.mxu0 %v1201_v46  ;;  %v819_v43 = vrot.slane %v236_v38, %v9755_v5  ;;  %v1227_v46 = vrot.slane %v260_v40, %v9755_v5  ;;  %v8648_v56 = vpack.c.bf16 %v497_v48, %v305_v47  ;;  %v311_v38 = vld [vmem:[%s9744_s12 + $0x108] sm:$0xff]  ;;  %v238_v47 = vld [vmem:[%s9738_s21 + $0x40] sm:$0xff] }
  0xab   : > { %8825 = vmatprep.subr.bf16.mxu0 %v8824_v49  ;;  %v8646_v49 = vpack.c.bf16 %v494_v42, %v302_v41  ;;  %v8658_v40 = vpack.c.bf16 %v500_v33, %v308_v32  ;;  %v407_v41 = vld [vmem:[%s9744_s12 + $0x408] sm:$0xff]  ;;  %v413_v32 = vld [vmem:[%s9744_s12 + $0x438] sm:$0xff] }
  0xac   : > { %v827_v53 = vcombine.high %v819_v43, %v819_v43  ;;  %v599_v42 = vld [vmem:[%s9744_s12 + $0xa08] sm:$0x3]  ;;  %v605_v33 = vld [vmem:[%s9744_s12 + $0xa38] sm:$0x3] }
  0xad   : > { %v8852_v48 = vpack.c.bf16 %v599_v42, %v407_v41  ;;  %v316_v41 = vld [vmem:[%s9744_s12 + $0x130] sm:$0xff] }
  0xae   : > { %v508_v42 = vld [vmem:[%s9744_s12 + $0x730] sm:$0x3] }
  0xaf   : > { %2343 = vmatmul.mubr.f32.vlgmr.msra.gmra.mrb[0].mxu1 %v785_v34  ;;  %v8834_v34 = vpack.c.bf16 %v588_v27, %v396_v26  ;;  %v829_v27 = vcombine.high %v237_v11, %v237_v11 }
  0xb0   : > { %8635 = vmatpush1.bf16.xpose.msra.mxu1 %v8634_v58  ;;  %2412 = vmatprep.mubr.f32.mxu1 %v794_v62  ;;  %v8840_v58 = vpack.c.bf16 %v593_v51, %v401_v50  ;;  %v400_v62 = vld [vmem:[%s9744_s12 + $0x3d0] sm:$0xff]  ;;  %v310_v50 = vld [vmem:[%s9744_s12 + $0x100] sm:$0xff] }
  0xb1   : > { %5703 = vmatmul.mubr.f32.vlgmr.msra.gmra.mrb[0].mxu0 %v1193_v37  ;;  %8637 = vmatprep.subr.bf16.mxu1 %v8636_v0  ;;  %v8644_v37 = vpack.c.bf16 %v495_v30, %v303_v29  ;;  %v1234_v0 = vrot.slane %v1220_v57, %v9755_v5  ;;  %v502_v51 = vld [vmem:[%s9744_s12 + $0x700] sm:$0x3]  ;;  %v505_v57 = vld [vmem:[%s9744_s12 + $0x718] sm:$0x3] }
  0xb2   : > { %8827 = vmatpush1.bf16.xpose.msra.mxu0 %v8826_v61  ;;  %5772 = vmatprep.mubr.f32.mxu0 %v1202_v63  ;;  %v826_v61 = vrot.slane %v812_v54, %v9755_v5  ;;  %v592_v63 = vld [vmem:[%s9744_s12 + $0x9d0] sm:$0x3]  ;;  %v598_v54 = vld [vmem:[%s9744_s12 + $0xa00] sm:$0x3] }
  0xb3   : > { %8829 = vmatprep.subr.bf16.mxu0 %v8828_v2  ;;  %v499_v2 = vld [vmem:[%s9744_s12 + $0x6e8] sm:$0x3]  ;;  %v1236_v9 = vcombine.high %v1234_v0, %v1234_v0 }
  0xb4   : > { %v828_v8 = vcombine.high %v826_v61, %v826_v61 }
  0xb7   : > { %2413 = vmatmul.mubr.f32.vlgmr.msra.gmra.mrb[0].mxu1 %v792_v52  ;;  %v8838_v52 = vpack.c.bf16 %v590_v45, %v398_v44 }
  0xb8   : > { %8639 = vmatpush1.bf16.xpose.msra.mxu1 %v8638_v13  ;;  %2482 = vmatprep.mubr.f32.mxu1 %v810_v17  ;;  %v261_v13 = vld [vmem:[%s9738_s21 + $0xf8] sm:$0xff]  ;;  %v402_v17 = vld [vmem:[%s9744_s12 + $0x3e0] sm:$0xff] }
  0xb9   : > { %5773 = vmatmul.mubr.f32.vlgmr.msra.gmra.mrb[0].mxu0 %v1200_v55  ;;  %8641 = vmatprep.subr.bf16.mxu1 %v8640_v20  ;;  %v1235_v55 = vcombine.high %v1227_v46, %v1227_v46  ;;  %v309_v20 = vld [vmem:[%s9744_s12 + $0xf8] sm:$0xff]  ;;  %v1237_v30 = vcombine.high %v261_v13, %v261_v13 }
  0xba   : > { %8831 = vmatpush1.bf16.xpose.msra.mxu0 %v8830_v16  ;;  %5842 = vmatprep.mubr.f32.mxu0 %v1218_v19  ;;  %v836_v16 = vrot.slane %v237_v11, %v9755_v5  ;;  %v1244_v19 = vrot.slane %v261_v13, %v9755_v5  ;;  %v8656_v29 = vpack.c.bf16 %v501_v21, %v309_v20  ;;  %v315_v11 = vld [vmem:[%s9744_s12 + $0x128] sm:$0xff] }
  0xbb   : > { %8833 = vmatprep.subr.bf16.mxu0 %v8832_v22  ;;  %v8654_v22 = vpack.c.bf16 %v498_v15, %v306_v14  ;;  %v8666_v13 = vpack.c.bf16 %v504_v6, %v312_v4  ;;  %v411_v14 = vld [vmem:[%s9744_s12 + $0x428] sm:$0xff]  ;;  %v417_v4 = vld [vmem:[%s9744_s12 + $0x458] sm:$0xff] }
  0xbc   : > { %v844_v26 = vcombine.high %v836_v16, %v836_v16  ;;  %v603_v15 = vld [vmem:[%s9744_s12 + $0xa28] sm:$0x3]  ;;  %v609_v6 = vld [vmem:[%s9744_s12 + $0xa58] sm:$0x3] }
  0xbd   : > { %v239_v20 = vld [vmem:[%s9738_s21 + $0x48] sm:$0xff]  ;;  %v8860_v21 = vpack.c.bf16 %v603_v15, %v411_v14  ;;  %v320_v14 = vld [vmem:[%s9744_s12 + $0x150] sm:$0xff] }
  0xbe   : > { %v512_v15 = vld [vmem:[%s9744_s12 + $0x750] sm:$0x3] }
  0xbf   : > { %2483 = vmatmul.mubr.f32.vlgmr.msra.gmra.mrb[0].mxu1 %v802_v7  ;;  %v8842_v7 = vpack.c.bf16 %v592_v63, %v400_v62  ;;  %v846_v63 = vcombine.high %v238_v47, %v238_v47 }
  0xc0   : > { %8643 = vmatpush1.bf16.xpose.msra.mxu1 %v8642_v31  ;;  %2552 = vmatprep.mubr.f32.mxu1 %v811_v35  ;;  %v8848_v31 = vpack.c.bf16 %v597_v24, %v405_v23  ;;  %v404_v35 = vld [vmem:[%s9744_s12 + $0x3f0] sm:$0xff]  ;;  %v314_v23 = vld [vmem:[%s9744_s12 + $0x120] sm:$0xff] }
  0xc1   : > { %5843 = vmatmul.mubr.f32.vlgmr.msra.gmra.mrb[0].mxu0 %v1210_v10  ;;  %8645 = vmatprep.subr.bf16.mxu1 %v8644_v37  ;;  %v8652_v10 = vpack.c.bf16 %v499_v2, %v307_v1  ;;  %v1251_v37 = vrot.slane %v1237_v30, %v9755_v5  ;;  %v506_v24 = vld [vmem:[%s9744_s12 + $0x720] sm:$0x3]  ;;  %v509_v30 = vld [vmem:[%s9744_s12 + $0x738] sm:$0x3] }
  0xc2   : > { %8835 = vmatpush1.bf16.xpose.msra.mxu0 %v8834_v34  ;;  %5912 = vmatprep.mubr.f32.mxu0 %v1219_v36  ;;  %v843_v34 = vrot.slane %v829_v27, %v9755_v5  ;;  %v596_v36 = vld [vmem:[%s9744_s12 + $0x9f0] sm:$0x3]  ;;  %v602_v27 = vld [vmem:[%s9744_s12 + $0xa20] sm:$0x3] }
  0xc3   : > { %8837 = vmatprep.subr.bf16.mxu0 %v8836_v39  ;;  %v503_v39 = vld [vmem:[%s9744_s12 + $0x708] sm:$0x3]  ;;  %v1253_v45 = vcombine.high %v1251_v37, %v1251_v37 }
  0xc4   : > { %v845_v44 = vcombine.high %v843_v34, %v843_v34 }
  0xc7   : > { %2553 = vmatmul.mubr.f32.vlgmr.msra.gmra.mrb[0].mxu1 %v809_v25  ;;  %v8846_v25 = vpack.c.bf16 %v594_v18, %v402_v17 }
  0xc8   : > { %8647 = vmatpush1.bf16.xpose.msra.mxu1 %v8646_v49  ;;  %2622 = vmatprep.mubr.f32.mxu1 %v827_v53  ;;  %v262_v49 = vld [vmem:[%s9738_s21 + $0x100] sm:$0xff] }
  0xc9   : > { %5913 = vmatmul.mubr.f32.vlgmr.msra.gmra.mrb[0].mxu0 %v1217_v28  ;;  %8649 = vmatprep.subr.bf16.mxu1 %v8648_v56  ;;  %v1252_v28 = vcombine.high %v1244_v19, %v1244_v19  ;;  %v406_v53 = vld [vmem:[%s9744_s12 + $0x400] sm:$0xff]  ;;  %v313_v56 = vld [vmem:[%s9744_s12 + $0x118] sm:$0xff]  ;;  %v1254_v2 = vcombine.high %v262_v49, %v262_v49 }
  0xca   : > { %8839 = vmatpush1.bf16.xpose.msra.mxu0 %v8838_v52  ;;  %5982 = vmatprep.mubr.f32.mxu0 %v1235_v55  ;;  %v853_v52 = vrot.slane %v238_v47, %v9755_v5  ;;  %v1261_v55 = vrot.slane %v262_v49, %v9755_v5  ;;  %v8664_v1 = vpack.c.bf16 %v505_v57, %v313_v56  ;;  %v319_v47 = vld [vmem:[%s9744_s12 + $0x148] sm:$0xff]  ;;  %v240_v56 = vld [vmem:[%s9738_s21 + $0x50] sm:$0xff] }
  0xcb   : > { %8841 = vmatprep.subr.bf16.mxu0 %v8840_v58  ;;  %v8662_v58 = vpack.c.bf16 %v502_v51, %v310_v50  ;;  %v8674_v49 = vpack.c.bf16 %v508_v42, %v316_v41  ;;  %v415_v50 = vld [vmem:[%s9744_s12 + $0x448] sm:$0xff]  ;;  %v421_v41 = vld [vmem:[%s9744_s12 + $0x478] sm:$0xff] }
  0xcc   : > { %v861_v62 = vcombine.high %v853_v52, %v853_v52  ;;  %v607_v51 = vld [vmem:[%s9744_s12 + $0xa48] sm:$0x3]  ;;  %v613_v42 = vld [vmem:[%s9744_s12 + $0xa78] sm:$0x3] }
  0xcd   : > { %v8868_v57 = vpack.c.bf16 %v607_v51, %v415_v50  ;;  %v324_v50 = vld [vmem:[%s9744_s12 + $0x170] sm:$0xff] }
  0xce   : > { %v516_v51 = vld [vmem:[%s9744_s12 + $0x770] sm:$0x3] }
  0xcf   : > { %2623 = vmatmul.mubr.f32.vlgmr.msra.gmra.mrb[0].mxu1 %v819_v43  ;;  %v8850_v43 = vpack.c.bf16 %v596_v36, %v404_v35  ;;  %v863_v36 = vcombine.high %v239_v20, %v239_v20 }
  0xd0   : > { %8651 = vmatpush1.bf16.xpose.msra.mxu1 %v8650_v3  ;;  %2692 = vmatprep.mubr.f32.mxu1 %v828_v8  ;;  %v8856_v3 = vpack.c.bf16 %v601_v60, %v409_v59  ;;  %v408_v8 = vld [vmem:[%s9744_s12 + $0x410] sm:$0xff]  ;;  %v318_v59 = vld [vmem:[%s9744_s12 + $0x140] sm:$0xff] }
  0xd1   : > { %5983 = vmatmul.mubr.f32.vlgmr.msra.gmra.mrb[0].mxu0 %v1227_v46  ;;  %8653 = vmatprep.subr.bf16.mxu1 %v8652_v10  ;;  %v8660_v46 = vpack.c.bf16 %v503_v39, %v311_v38  ;;  %v1268_v10 = vrot.slane %v1254_v2, %v9755_v5  ;;  %v510_v60 = vld [vmem:[%s9744_s12 + $0x740] sm:$0x3]  ;;  %v513_v2 = vld [vmem:[%s9744_s12 + $0x758] sm:$0x3] }
  0xd2   : > { %8843 = vmatpush1.bf16.xpose.msra.mxu0 %v8842_v7  ;;  %6052 = vmatprep.mubr.f32.mxu0 %v1236_v9  ;;  %v860_v7 = vrot.slane %v846_v63, %v9755_v5  ;;  %v600_v9 = vld [vmem:[%s9744_s12 + $0xa10] sm:$0x3]  ;;  %v606_v63 = vld [vmem:[%s9744_s12 + $0xa40] sm:$0x3] }
  0xd3   : > { %8845 = vmatprep.subr.bf16.mxu0 %v8844_v12  ;;  %v507_v12 = vld [vmem:[%s9744_s12 + $0x728] sm:$0x3]  ;;  %v1270_v18 = vcombine.high %v1268_v10, %v1268_v10 }
  0xd4   : > { %v862_v17 = vcombine.high %v860_v7, %v860_v7 }
  0xd7   : > { %2693 = vmatmul.mubr.f32.vlgmr.msra.gmra.mrb[0].mxu1 %v826_v61  ;;  %v8854_v61 = vpack.c.bf16 %v598_v54, %v406_v53 }
  0xd8   : > { %8655 = vmatpush1.bf16.xpose.msra.mxu1 %v8654_v22  ;;  %2762 = vmatprep.mubr.f32.mxu1 %v844_v26  ;;  %v263_v22 = vld [vmem:[%s9738_s21 + $0x108] sm:$0xff]  ;;  %v410_v26 = vld [vmem:[%s9744_s12 + $0x420] sm:$0xff] }
  0xd9   : > { %6053 = vmatmul.mubr.f32.vlgmr.msra.gmra.mrb[0].mxu0 %v1234_v0  ;;  %8657 = vmatprep.subr.bf16.mxu1 %v8656_v29  ;;  %v1269_v0 = vcombine.high %v1261_v55, %v1261_v55  ;;  %v317_v29 = vld [vmem:[%s9744_s12 + $0x138] sm:$0xff]  ;;  %v1271_v39 = vcombine.high %v263_v22, %v263_v22 }
  0xda   : > { %8847 = vmatpush1.bf16.xpose.msra.mxu0 %v8846_v25  ;;  %6122 = vmatprep.mubr.f32.mxu0 %v1252_v28  ;;  %v870_v25 = vrot.slane %v239_v20, %v9755_v5  ;;  %v1278_v28 = vrot.slane %v263_v22, %v9755_v5  ;;  %v8672_v38 = vpack.c.bf16 %v509_v30, %v317_v29  ;;  %v323_v20 = vld [vmem:[%s9744_s12 + $0x168] sm:$0xff]  ;;  %v241_v29 = vld [vmem:[%s9738_s21 + $0x58] sm:$0xff] }
  0xdb   : > { %8849 = vmatprep.subr.bf16.mxu0 %v8848_v31  ;;  %v8670_v31 = vpack.c.bf16 %v506_v24, %v314_v23  ;;  %v8682_v22 = vpack.c.bf16 %v512_v15, %v320_v14  ;;  %v419_v23 = vld [vmem:[%s9744_s12 + $0x468] sm:$0xff]  ;;  %v425_v14 = vld [vmem:[%s9744_s12 + $0x498] sm:$0xff] }
  0xdc   : > { %v878_v35 = vcombine.high %v870_v25, %v870_v25  ;;  %v611_v24 = vld [vmem:[%s9744_s12 + $0xa68] sm:$0x3]  ;;  %v617_v15 = vld [vmem:[%s9744_s12 + $0xa98] sm:$0x3] }
  0xdd   : > { %v8876_v30 = vpack.c.bf16 %v611_v24, %v419_v23  ;;  %v328_v23 = vld [vmem:[%s9744_s12 + $0x190] sm:$0xff] }
  0xde   : > { %v520_v24 = vld [vmem:[%s9744_s12 + $0x790] sm:$0x3] }
  0xdf   : > { %2763 = vmatmul.mubr.f32.vlgmr.msra.gmra.mrb[0].mxu1 %v836_v16  ;;  %v8858_v16 = vpack.c.bf16 %v600_v9, %v408_v8  ;;  %v880_v9 = vcombine.high %v240_v56, %v240_v56 }
  0xe0   : > { %8659 = vmatpush1.bf16.xpose.msra.mxu1 %v8658_v40  ;;  %2832 = vmatprep.mubr.f32.mxu1 %v845_v44  ;;  %v8864_v40 = vpack.c.bf16 %v605_v33, %v413_v32  ;;  %v412_v44 = vld [vmem:[%s9744_s12 + $0x430] sm:$0xff]  ;;  %v322_v32 = vld [vmem:[%s9744_s12 + $0x160] sm:$0xff] }
  0xe1   : > { %6123 = vmatmul.mubr.f32.vlgmr.msra.gmra.mrb[0].mxu0 %v1244_v19  ;;  %8661 = vmatprep.subr.bf16.mxu1 %v8660_v46  ;;  %v8668_v19 = vpack.c.bf16 %v507_v12, %v315_v11  ;;  %v1285_v46 = vrot.slane %v1271_v39, %v9755_v5  ;;  %v514_v33 = vld [vmem:[%s9744_s12 + $0x760] sm:$0x3]  ;;  %v517_v39 = vld [vmem:[%s9744_s12 + $0x778] sm:$0x3] }
  0xe2   : > { %8851 = vmatpush1.bf16.xpose.msra.mxu0 %v8850_v43  ;;  %6192 = vmatprep.mubr.f32.mxu0 %v1253_v45  ;;  %v877_v43 = vrot.slane %v863_v36, %v9755_v5  ;;  %v604_v45 = vld [vmem:[%s9744_s12 + $0xa30] sm:$0x3]  ;;  %v610_v36 = vld [vmem:[%s9744_s12 + $0xa60] sm:$0x3] }
  0xe3   : > { %8853 = vmatprep.subr.bf16.mxu0 %v8852_v48  ;;  %v511_v48 = vld [vmem:[%s9744_s12 + $0x748] sm:$0x3]  ;;  %v1287_v54 = vcombine.high %v1285_v46, %v1285_v46 }
  0xe4   : > { %v879_v53 = vcombine.high %v877_v43, %v877_v43 }
  0xe7   : > { %2833 = vmatmul.mubr.f32.vlgmr.msra.gmra.mrb[0].mxu1 %v843_v34  ;;  %v8862_v34 = vpack.c.bf16 %v602_v27, %v410_v26 }
  0xe8   : > { %8663 = vmatpush1.bf16.xpose.msra.mxu1 %v8662_v58  ;;  %2902 = vmatprep.mubr.f32.mxu1 %v861_v62  ;;  %v264_v58 = vld [vmem:[%s9738_s21 + $0x110] sm:$0xff]  ;;  %v414_v62 = vld [vmem:[%s9744_s12 + $0x440] sm:$0xff] }
  0xe9   : > { %6193 = vmatmul.mubr.f32.vlgmr.msra.gmra.mrb[0].mxu0 %v1251_v37  ;;  %8665 = vmatprep.subr.bf16.mxu1 %v8664_v1  ;;  %v1286_v37 = vcombine.high %v1278_v28, %v1278_v28  ;;  %v321_v1 = vld [vmem:[%s9744_s12 + $0x158] sm:$0xff]  ;;  %v1288_v12 = vcombine.high %v264_v58, %v264_v58 }
  0xea   : > { %8855 = vmatpush1.bf16.xpose.msra.mxu0 %v8854_v61  ;;  %6262 = vmatprep.mubr.f32.mxu0 %v1269_v0  ;;  %v887_v61 = vrot.slane %v240_v56, %v9755_v5  ;;  %v1295_v0 = vrot.slane %v264_v58, %v9755_v5  ;;  %v8680_v11 = vpack.c.bf16 %v513_v2, %v321_v1  ;;  %v327_v56 = vld [vmem:[%s9744_s12 + $0x188] sm:$0xff]  ;;  %v242_v1 = vld [vmem:[%s9738_s21 + $0x60] sm:$0xff] }
  0xeb   : > { %8857 = vmatprep.subr.bf16.mxu0 %v8856_v3  ;;  %v8678_v3 = vpack.c.bf16 %v510_v60, %v318_v59  ;;  %v8690_v58 = vpack.c.bf16 %v516_v51, %v324_v50  ;;  %v423_v59 = vld [vmem:[%s9744_s12 + $0x488] sm:$0xff]  ;;  %v429_v50 = vld [vmem:[%s9744_s12 + $0x4b8] sm:$0xff] }
  0xec   : > { %v895_v8 = vcombine.high %v887_v61, %v887_v61  ;;  %v615_v60 = vld [vmem:[%s9744_s12 + $0xa88] sm:$0x3]  ;;  %v621_v51 = vld [vmem:[%s9744_s12 + $0xab8] sm:$0x3] }
  0xed   : > { %v8884_v2 = vpack.c.bf16 %v615_v60, %v423_v59  ;;  %v332_v59 = vld [vmem:[%s9744_s12 + $0x1b0] sm:$0xff] }
  0xee   : > { %v524_v60 = vld [vmem:[%s9744_s12 + $0x7b0] sm:$0x3] }
  0xef   : > { %2903 = vmatmul.mubr.f32.vlgmr.msra.gmra.mrb[0].mxu1 %v853_v52  ;;  %v8866_v52 = vpack.c.bf16 %v604_v45, %v412_v44  ;;  %v897_v45 = vcombine.high %v241_v29, %v241_v29 }
  0xf0   : > { %8667 = vmatpush1.bf16.xpose.msra.mxu1 %v8666_v13  ;;  %2972 = vmatprep.mubr.f32.mxu1 %v862_v17  ;;  %v8872_v13 = vpack.c.bf16 %v609_v6, %v417_v4  ;;  %v416_v17 = vld [vmem:[%s9744_s12 + $0x450] sm:$0xff]  ;;  %v326_v4 = vld [vmem:[%s9744_s12 + $0x180] sm:$0xff] }
  0xf1   : > { %6263 = vmatmul.mubr.f32.vlgmr.msra.gmra.mrb[0].mxu0 %v1261_v55  ;;  %8669 = vmatprep.subr.bf16.mxu1 %v8668_v19  ;;  %v8676_v55 = vpack.c.bf16 %v511_v48, %v319_v47  ;;  %v1302_v19 = vrot.slane %v1288_v12, %v9755_v5  ;;  %v518_v6 = vld [vmem:[%s9744_s12 + $0x780] sm:$0x3]  ;;  %v521_v12 = vld [vmem:[%s9744_s12 + $0x798] sm:$0x3] }
  0xf2   : > { %8859 = vmatpush1.bf16.xpose.msra.mxu0 %v8858_v16  ;;  %6332 = vmatprep.mubr.f32.mxu0 %v1270_v18  ;;  %v894_v16 = vrot.slane %v880_v9, %v9755_v5  ;;  %v608_v18 = vld [vmem:[%s9744_s12 + $0xa50] sm:$0x3]  ;;  %v614_v9 = vld [vmem:[%s9744_s12 + $0xa80] sm:$0x3] }
  0xf3   : > { %8861 = vmatprep.subr.bf16.mxu0 %v8860_v21  ;;  %v515_v21 = vld [vmem:[%s9744_s12 + $0x768] sm:$0x3]  ;;  %v1304_v27 = vcombine.high %v1302_v19, %v1302_v19 }
  0xf4   : > { %v896_v26 = vcombine.high %v894_v16, %v894_v16 }
  0xf7   : > { %2973 = vmatmul.mubr.f32.vlgmr.msra.gmra.mrb[0].mxu1 %v860_v7  ;;  %v8870_v7 = vpack.c.bf16 %v606_v63, %v414_v62 }
  0xf8   : > { %8671 = vmatpush1.bf16.xpose.msra.mxu1 %v8670_v31  ;;  %3042 = vmatprep.mubr.f32.mxu1 %v878_v35  ;;  %v265_v31 = vld [vmem:[%s9738_s21 + $0x118] sm:$0xff]  ;;  %v418_v35 = vld [vmem:[%s9744_s12 + $0x460] sm:$0xff] }
  0xf9   : > { %6333 = vmatmul.mubr.f32.vlgmr.msra.gmra.mrb[0].mxu0 %v1268_v10  ;;  %8673 = vmatprep.subr.bf16.mxu1 %v8672_v38  ;;  %v1303_v10 = vcombine.high %v1295_v0, %v1295_v0  ;;  %v325_v38 = vld [vmem:[%s9744_s12 + $0x178] sm:$0xff]  ;;  %v1305_v48 = vcombine.high %v265_v31, %v265_v31 }
  0xfa   : > { %8863 = vmatpush1.bf16.xpose.msra.mxu0 %v8862_v34  ;;  %6402 = vmatprep.mubr.f32.mxu0 %v1286_v37  ;;  %v904_v34 = vrot.slane %v241_v29, %v9755_v5  ;;  %v1312_v37 = vrot.slane %v265_v31, %v9755_v5  ;;  %v8688_v47 = vpack.c.bf16 %v517_v39, %v325_v38  ;;  %v331_v29 = vld [vmem:[%s9744_s12 + $0x1a8] sm:$0xff] }
  0xfb   : > { %8865 = vmatprep.subr.bf16.mxu0 %v8864_v40  ;;  %v8686_v40 = vpack.c.bf16 %v514_v33, %v322_v32  ;;  %v8698_v31 = vpack.c.bf16 %v520_v24, %v328_v23  ;;  %v427_v32 = vld [vmem:[%s9744_s12 + $0x4a8] sm:$0xff]  ;;  %v433_v23 = vld [vmem:[%s9744_s12 + $0x4d8] sm:$0xff] }
  0xfc   : > { %v912_v44 = vcombine.high %v904_v34, %v904_v34  ;;  %v619_v33 = vld [vmem:[%s9744_s12 + $0xaa8] sm:$0x3]  ;;  %v625_v24 = vld [vmem:[%s9744_s12 + $0xad8] sm:$0x3] }
  0xfd   : > { %v243_v38 = vld [vmem:[%s9738_s21 + $0x68] sm:$0xff]  ;;  %v8892_v39 = vpack.c.bf16 %v619_v33, %v427_v32  ;;  %v336_v32 = vld [vmem:[%s9744_s12 + $0x1d0] sm:$0xff] }
  0xfe   : > { %v528_v33 = vld [vmem:[%s9744_s12 + $0x7d0] sm:$0x3] }
  0xff   : > { %3043 = vmatmul.mubr.f32.vlgmr.msra.gmra.mrb[0].mxu1 %v870_v25  ;;  %v8874_v25 = vpack.c.bf16 %v608_v18, %v416_v17  ;;  %v914_v18 = vcombine.high %v242_v1, %v242_v1 }
 0x100   : > { %8675 = vmatpush1.bf16.xpose.msra.mxu1 %v8674_v49  ;;  %3112 = vmatprep.mubr.f32.mxu1 %v879_v53  ;;  %v8880_v49 = vpack.c.bf16 %v613_v42, %v421_v41  ;;  %v420_v53 = vld [vmem:[%s9744_s12 + $0x470] sm:$0xff]  ;;  %v330_v41 = vld [vmem:[%s9744_s12 + $0x1a0] sm:$0xff] }
 0x101   : > { %6403 = vmatmul.mubr.f32.vlgmr.msra.gmra.mrb[0].mxu0 %v1278_v28  ;;  %8677 = vmatprep.subr.bf16.mxu1 %v8676_v55  ;;  %v8684_v28 = vpack.c.bf16 %v515_v21, %v323_v20  ;;  %v1319_v55 = vrot.slane %v1305_v48, %v9755_v5  ;;  %v522_v42 = vld [vmem:[%s9744_s12 + $0x7a0] sm:$0x3]  ;;  %v525_v48 = vld [vmem:[%s9744_s12 + $0x7b8] sm:$0x3] }
 0x102   : > { %8867 = vmatpush1.bf16.xpose.msra.mxu0 %v8866_v52  ;;  %6472 = vmatprep.mubr.f32.mxu0 %v1287_v54  ;;  %v911_v52 = vrot.slane %v897_v45, %v9755_v5  ;;  %v612_v54 = vld [vmem:[%s9744_s12 + $0xa70] sm:$0x3]  ;;  %v618_v45 = vld [vmem:[%s9744_s12 + $0xaa0] sm:$0x3] }
 0x103   : > { %8869 = vmatprep.subr.bf16.mxu0 %v8868_v57  ;;  %v519_v57 = vld [vmem:[%s9744_s12 + $0x788] sm:$0x3]  ;;  %v1321_v63 = vcombine.high %v1319_v55, %v1319_v55 }
 0x104   : > { %v913_v62 = vcombine.high %v911_v52, %v911_v52 }
 0x107   : > { %3113 = vmatmul.mubr.f32.vlgmr.msra.gmra.mrb[0].mxu1 %v877_v43  ;;  %v8878_v43 = vpack.c.bf16 %v610_v36, %v418_v35 }
 0x108   : > { %8679 = vmatpush1.bf16.xpose.msra.mxu1 %v8678_v3  ;;  %3182 = vmatprep.mubr.f32.mxu1 %v895_v8  ;;  %v266_v3 = vld [vmem:[%s9738_s21 + $0x120] sm:$0xff] }
 0x109   : > { %6473 = vmatmul.mubr.f32.vlgmr.msra.gmra.mrb[0].mxu0 %v1285_v46  ;;  %8681 = vmatprep.subr.bf16.mxu1 %v8680_v11  ;;  %v1320_v46 = vcombine.high %v1312_v37, %v1312_v37  ;;  %v422_v8 = vld [vmem:[%s9744_s12 + $0x480] sm:$0xff]  ;;  %v329_v11 = vld [vmem:[%s9744_s12 + $0x198] sm:$0xff]  ;;  %v1322_v21 = vcombine.high %v266_v3, %v266_v3 }
 0x10a   : > { %8871 = vmatpush1.bf16.xpose.msra.mxu0 %v8870_v7  ;;  %6542 = vmatprep.mubr.f32.mxu0 %v1303_v10  ;;  %v921_v7 = vrot.slane %v242_v1, %v9755_v5  ;;  %v1329_v10 = vrot.slane %v266_v3, %v9755_v5  ;;  %v8696_v20 = vpack.c.bf16 %v521_v12, %v329_v11  ;;  %v335_v1 = vld [vmem:[%s9744_s12 + $0x1c8] sm:$0xff]  ;;  %v244_v11 = vld [vmem:[%s9738_s21 + $0x70] sm:$0xff] }
 0x10b   : > { %8873 = vmatprep.subr.bf16.mxu0 %v8872_v13  ;;  %v8694_v13 = vpack.c.bf16 %v518_v6, %v326_v4  ;;  %v8706_v3 = vpack.c.bf16 %v524_v60, %v332_v59  ;;  %v431_v4 = vld [vmem:[%s9744_s12 + $0x4c8] sm:$0xff]  ;;  %v437_v59 = vld [vmem:[%s9744_s12 + $0x4f8] sm:$0xff] }
 0x10c   : > { %v929_v17 = vcombine.high %v921_v7, %v921_v7  ;;  %v623_v6 = vld [vmem:[%s9744_s12 + $0xac8] sm:$0x3]  ;;  %v629_v60 = vld [vmem:[%s9744_s12 + $0xaf8] sm:$0x3] }
 0x10d   : > { %v8900_v12 = vpack.c.bf16 %v623_v6, %v431_v4  ;;  %v340_v4 = vld [vmem:[%s9744_s12 + $0x1f0] sm:$0xff] }
 0x10e   : > { %v532_v6 = vld [vmem:[%s9744_s12 + $0x7f0] sm:$0x3] }
 0x10f   : > { %3183 = vmatmul.mubr.f32.vlgmr.msra.gmra.mrb[0].mxu1 %v887_v61  ;;  %v8882_v61 = vpack.c.bf16 %v612_v54, %v420_v53  ;;  %v931_v54 = vcombine.high %v243_v38, %v243_v38 }
 0x110   : > { %8683 = vmatpush1.bf16.xpose.msra.mxu1 %v8682_v22  ;;  %3252 = vmatprep.mubr.f32.mxu1 %v896_v26  ;;  %v8888_v22 = vpack.c.bf16 %v617_v15, %v425_v14  ;;  %v424_v26 = vld [vmem:[%s9744_s12 + $0x490] sm:$0xff]  ;;  %v334_v14 = vld [vmem:[%s9744_s12 + $0x1c0] sm:$0xff] }
 0x111   : > { %6543 = vmatmul.mubr.f32.vlgmr.msra.gmra.mrb[0].mxu0 %v1295_v0  ;;  %8685 = vmatprep.subr.bf16.mxu1 %v8684_v28  ;;  %v8692_v0 = vpack.c.bf16 %v519_v57, %v327_v56  ;;  %v1336_v28 = vrot.slane %v1322_v21, %v9755_v5  ;;  %v526_v15 = vld [vmem:[%s9744_s12 + $0x7c0] sm:$0x3]  ;;  %v529_v21 = vld [vmem:[%s9744_s12 + $0x7d8] sm:$0x3] }
 0x112   : > { %8875 = vmatpush1.bf16.xpose.msra.mxu0 %v8874_v25  ;;  %6612 = vmatprep.mubr.f32.mxu0 %v1304_v27  ;;  %v928_v25 = vrot.slane %v914_v18, %v9755_v5  ;;  %v616_v27 = vld [vmem:[%s9744_s12 + $0xa90] sm:$0x3]  ;;  %v622_v18 = vld [vmem:[%s9744_s12 + $0xac0] sm:$0x3] }
 0x113   : > { %8877 = vmatprep.subr.bf16.mxu0 %v8876_v30  ;;  %v523_v30 = vld [vmem:[%s9744_s12 + $0x7a8] sm:$0x3]  ;;  %v1338_v36 = vcombine.high %v1336_v28, %v1336_v28 }
 0x114   : > { %v930_v35 = vcombine.high %v928_v25, %v928_v25 }
 0x117   : > { %3253 = vmatmul.mubr.f32.vlgmr.msra.gmra.mrb[0].mxu1 %v894_v16  ;;  %v8886_v16 = vpack.c.bf16 %v614_v9, %v422_v8 }
 0x118   : > { %8687 = vmatpush1.bf16.xpose.msra.mxu1 %v8686_v40  ;;  %3322 = vmatprep.mubr.f32.mxu1 %v912_v44  ;;  %v267_v40 = vld [vmem:[%s9738_s21 + $0x128] sm:$0xff]  ;;  %v426_v44 = vld [vmem:[%s9744_s12 + $0x4a0] sm:$0xff] }
 0x119   : > { %6613 = vmatmul.mubr.f32.vlgmr.msra.gmra.mrb[0].mxu0 %v1302_v19  ;;  %8689 = vmatprep.subr.bf16.mxu1 %v8688_v47  ;;  %v1337_v19 = vcombine.high %v1329_v10, %v1329_v10  ;;  %v333_v47 = vld [vmem:[%s9744_s12 + $0x1b8] sm:$0xff]  ;;  %v1339_v57 = vcombine.high %v267_v40, %v267_v40 }
 0x11a   : > { %8879 = vmatpush1.bf16.xpose.msra.mxu0 %v8878_v43  ;;  %6682 = vmatprep.mubr.f32.mxu0 %v1320_v46  ;;  %v938_v43 = vrot.slane %v243_v38, %v9755_v5  ;;  %v1346_v46 = vrot.slane %v267_v40, %v9755_v5  ;;  %v8704_v56 = vpack.c.bf16 %v525_v48, %v333_v47  ;;  %v339_v38 = vld [vmem:[%s9744_s12 + $0x1e8] sm:$0xff]  ;;  %v245_v47 = vld [vmem:[%s9738_s21 + $0x78] sm:$0xff] }
 0x11b   : > { %8881 = vmatprep.subr.bf16.mxu0 %v8880_v49  ;;  %v8702_v49 = vpack.c.bf16 %v522_v42, %v330_v41  ;;  %v8714_v40 = vpack.c.bf16 %v528_v33, %v336_v32  ;;  %v435_v41 = vld [vmem:[%s9744_s12 + $0x4e8] sm:$0xff]  ;;  %v441_v32 = vld [vmem:[%s9744_s12 + $0x518] sm:$0xff] }
 0x11c   : > { %v946_v53 = vcombine.high %v938_v43, %v938_v43  ;;  %v627_v42 = vld [vmem:[%s9744_s12 + $0xae8] sm:$0x3]  ;;  %v633_v33 = vld [vmem:[%s9744_s12 + $0xb18] sm:$0x3] }
 0x11d   : > { %v8908_v48 = vpack.c.bf16 %v627_v42, %v435_v41  ;;  %v344_v41 = vld [vmem:[%s9744_s12 + $0x210] sm:$0xff] }
 0x11e   : > { %v536_v42 = vld [vmem:[%s9744_s12 + $0x810] sm:$0x3] }
 0x11f   : > { %3323 = vmatmul.mubr.f32.vlgmr.msra.gmra.mrb[0].mxu1 %v904_v34  ;;  %v8890_v34 = vpack.c.bf16 %v616_v27, %v424_v26  ;;  %v948_v27 = vcombine.high %v244_v11, %v244_v11 }
 0x120   : > { %8691 = vmatpush1.bf16.xpose.msra.mxu1 %v8690_v58  ;;  %3392 = vmatprep.mubr.f32.mxu1 %v913_v62  ;;  %v8896_v58 = vpack.c.bf16 %v621_v51, %v429_v50  ;;  %v428_v62 = vld [vmem:[%s9744_s12 + $0x4b0] sm:$0xff]  ;;  %v338_v50 = vld [vmem:[%s9744_s12 + $0x1e0] sm:$0xff] }
 0x121   : > { %6683 = vmatmul.mubr.f32.vlgmr.msra.gmra.mrb[0].mxu0 %v1312_v37  ;;  %8693 = vmatprep.subr.bf16.mxu1 %v8692_v0  ;;  %v8700_v37 = vpack.c.bf16 %v523_v30, %v331_v29  ;;  %v1353_v0 = vrot.slane %v1339_v57, %v9755_v5  ;;  %v530_v51 = vld [vmem:[%s9744_s12 + $0x7e0] sm:$0x3]  ;;  %v533_v57 = vld [vmem:[%s9744_s12 + $0x7f8] sm:$0x3] }
 0x122   : > { %8883 = vmatpush1.bf16.xpose.msra.mxu0 %v8882_v61  ;;  %6752 = vmatprep.mubr.f32.mxu0 %v1321_v63  ;;  %v945_v61 = vrot.slane %v931_v54, %v9755_v5  ;;  %v620_v63 = vld [vmem:[%s9744_s12 + $0xab0] sm:$0x3]  ;;  %v626_v54 = vld [vmem:[%s9744_s12 + $0xae0] sm:$0x3] }
 0x123   : > { %8885 = vmatprep.subr.bf16.mxu0 %v8884_v2  ;;  %v527_v2 = vld [vmem:[%s9744_s12 + $0x7c8] sm:$0x3]  ;;  %v1355_v9 = vcombine.high %v1353_v0, %v1353_v0 }
 0x124   : > { %v947_v8 = vcombine.high %v945_v61, %v945_v61 }
 0x127   : > { %3393 = vmatmul.mubr.f32.vlgmr.msra.gmra.mrb[0].mxu1 %v911_v52  ;;  %v8894_v52 = vpack.c.bf16 %v618_v45, %v426_v44 }
 0x128   : > { %8695 = vmatpush1.bf16.xpose.msra.mxu1 %v8694_v13  ;;  %3462 = vmatprep.mubr.f32.mxu1 %v929_v17  ;;  %v268_v13 = vld [vmem:[%s9738_s21 + $0x130] sm:$0xff]  ;;  %v430_v17 = vld [vmem:[%s9744_s12 + $0x4c0] sm:$0xff] }
 0x129   : > { %6753 = vmatmul.mubr.f32.vlgmr.msra.gmra.mrb[0].mxu0 %v1319_v55  ;;  %8697 = vmatprep.subr.bf16.mxu1 %v8696_v20  ;;  %v1354_v55 = vcombine.high %v1346_v46, %v1346_v46  ;;  %v337_v20 = vld [vmem:[%s9744_s12 + $0x1d8] sm:$0xff]  ;;  %v1356_v30 = vcombine.high %v268_v13, %v268_v13 }
 0x12a   : > { %8887 = vmatpush1.bf16.xpose.msra.mxu0 %v8886_v16  ;;  %6822 = vmatprep.mubr.f32.mxu0 %v1337_v19  ;;  %v955_v16 = vrot.slane %v244_v11, %v9755_v5  ;;  %v1363_v19 = vrot.slane %v268_v13, %v9755_v5  ;;  %v8712_v29 = vpack.c.bf16 %v529_v21, %v337_v20  ;;  %v343_v11 = vld [vmem:[%s9744_s12 + $0x208] sm:$0xff]  ;;  %v246_v20 = vld [vmem:[%s9738_s21 + $0x80] sm:$0xff] }
 0x12b   : > { %8889 = vmatprep.subr.bf16.mxu0 %v8888_v22  ;;  %v8710_v22 = vpack.c.bf16 %v526_v15, %v334_v14  ;;  %v8722_v13 = vpack.c.bf16 %v532_v6, %v340_v4  ;;  %v439_v14 = vld [vmem:[%s9744_s12 + $0x508] sm:$0xff]  ;;  %v445_v4 = vld [vmem:[%s9744_s12 + $0x538] sm:$0xff] }
 0x12c   : > { %v963_v26 = vcombine.high %v955_v16, %v955_v16  ;;  %v631_v15 = vld [vmem:[%s9744_s12 + $0xb08] sm:$0x3]  ;;  %v637_v6 = vld [vmem:[%s9744_s12 + $0xb38] sm:$0x3] }
 0x12d   : > { %v8916_v21 = vpack.c.bf16 %v631_v15, %v439_v14  ;;  %v348_v14 = vld [vmem:[%s9744_s12 + $0x230] sm:$0xff] }
 0x12e   : > { %v540_v15 = vld [vmem:[%s9744_s12 + $0x830] sm:$0x3] }
 0x12f   : > { %3463 = vmatmul.mubr.f32.vlgmr.msra.gmra.mrb[0].mxu1 %v921_v7  ;;  %v8898_v7 = vpack.c.bf16 %v620_v63, %v428_v62  ;;  %v965_v63 = vcombine.high %v245_v47, %v245_v47 }
 0x130   : > { %8699 = vmatpush1.bf16.xpose.msra.mxu1 %v8698_v31  ;;  %3532 = vmatprep.mubr.f32.mxu1 %v930_v35  ;;  %v8904_v31 = vpack.c.bf16 %v625_v24, %v433_v23  ;;  %v432_v35 = vld [vmem:[%s9744_s12 + $0x4d0] sm:$0xff]  ;;  %v342_v23 = vld [vmem:[%s9744_s12 + $0x200] sm:$0xff] }
 0x131   : > { %6823 = vmatmul.mubr.f32.vlgmr.msra.gmra.mrb[0].mxu0 %v1329_v10  ;;  %8701 = vmatprep.subr.bf16.mxu1 %v8700_v37  ;;  %v8708_v10 = vpack.c.bf16 %v527_v2, %v335_v1  ;;  %v1370_v37 = vrot.slane %v1356_v30, %v9755_v5  ;;  %v534_v24 = vld [vmem:[%s9744_s12 + $0x800] sm:$0x3]  ;;  %v537_v30 = vld [vmem:[%s9744_s12 + $0x818] sm:$0x3] }
 0x132   : > { %8891 = vmatpush1.bf16.xpose.msra.mxu0 %v8890_v34  ;;  %6892 = vmatprep.mubr.f32.mxu0 %v1338_v36  ;;  %v962_v34 = vrot.slane %v948_v27, %v9755_v5  ;;  %v624_v36 = vld [vmem:[%s9744_s12 + $0xad0] sm:$0x3]  ;;  %v630_v27 = vld [vmem:[%s9744_s12 + $0xb00] sm:$0x3] }
 0x133   : > { %8893 = vmatprep.subr.bf16.mxu0 %v8892_v39  ;;  %v531_v39 = vld [vmem:[%s9744_s12 + $0x7e8] sm:$0x3]  ;;  %v1372_v45 = vcombine.high %v1370_v37, %v1370_v37 }
 0x134   : > { %v964_v44 = vcombine.high %v962_v34, %v962_v34 }
 0x137   : > { %3533 = vmatmul.mubr.f32.vlgmr.msra.gmra.mrb[0].mxu1 %v928_v25  ;;  %v8902_v25 = vpack.c.bf16 %v622_v18, %v430_v17 }
 0x138   : > { %8703 = vmatpush1.bf16.xpose.msra.mxu1 %v8702_v49  ;;  %3602 = vmatprep.mubr.f32.mxu1 %v946_v53  ;;  %v269_v49 = vld [vmem:[%s9738_s21 + $0x138] sm:$0xff]  ;;  %v434_v53 = vld [vmem:[%s9744_s12 + $0x4e0] sm:$0xff] }
 0x139   : > { %6893 = vmatmul.mubr.f32.vlgmr.msra.gmra.mrb[0].mxu0 %v1336_v28  ;;  %8705 = vmatprep.subr.bf16.mxu1 %v8704_v56  ;;  %v1371_v28 = vcombine.high %v1363_v19, %v1363_v19  ;;  %v341_v56 = vld [vmem:[%s9744_s12 + $0x1f8] sm:$0xff]  ;;  %v1373_v2 = vcombine.high %v269_v49, %v269_v49 }
 0x13a   : > { %8895 = vmatpush1.bf16.xpose.msra.mxu0 %v8894_v52  ;;  %6962 = vmatprep.mubr.f32.mxu0 %v1354_v55  ;;  %v972_v52 = vrot.slane %v245_v47, %v9755_v5  ;;  %v1380_v55 = vrot.slane %v269_v49, %v9755_v5  ;;  %v8720_v1 = vpack.c.bf16 %v533_v57, %v341_v56  ;;  %v347_v47 = vld [vmem:[%s9744_s12 + $0x228] sm:$0xff] }
 0x13b   : > { %8897 = vmatprep.subr.bf16.mxu0 %v8896_v58  ;;  %v8718_v58 = vpack.c.bf16 %v530_v51, %v338_v50  ;;  %v8730_v49 = vpack.c.bf16 %v536_v42, %v344_v41  ;;  %v443_v50 = vld [vmem:[%s9744_s12 + $0x528] sm:$0xff]  ;;  %v449_v41 = vld [vmem:[%s9744_s12 + $0x558] sm:$0xff] }
 0x13c   : > { %v980_v62 = vcombine.high %v972_v52, %v972_v52  ;;  %v635_v51 = vld [vmem:[%s9744_s12 + $0xb28] sm:$0x3]  ;;  %v641_v42 = vld [vmem:[%s9744_s12 + $0xb58] sm:$0x3] }
 0x13d   : > { %v247_v56 = vld [vmem:[%s9738_s21 + $0x88] sm:$0xff]  ;;  %v8924_v57 = vpack.c.bf16 %v635_v51, %v443_v50  ;;  %v352_v50 = vld [vmem:[%s9744_s12 + $0x250] sm:$0xff] }
 0x13e   : > { %v544_v51 = vld [vmem:[%s9744_s12 + $0x850] sm:$0x3] }
 0x13f   : > { %3603 = vmatmul.mubr.f32.vlgmr.msra.gmra.mrb[0].mxu1 %v938_v43  ;;  %v8906_v43 = vpack.c.bf16 %v624_v36, %v432_v35  ;;  %v982_v36 = vcombine.high %v246_v20, %v246_v20 }
 0x140   : > { %8707 = vmatpush1.bf16.xpose.msra.mxu1 %v8706_v3  ;;  %3672 = vmatprep.mubr.f32.mxu1 %v947_v8  ;;  %v8912_v3 = vpack.c.bf16 %v629_v60, %v437_v59  ;;  %v436_v8 = vld [vmem:[%s9744_s12 + $0x4f0] sm:$0xff]  ;;  %v346_v59 = vld [vmem:[%s9744_s12 + $0x220] sm:$0xff] }
 0x141   : > { %6963 = vmatmul.mubr.f32.vlgmr.msra.gmra.mrb[0].mxu0 %v1346_v46  ;;  %8709 = vmatprep.subr.bf16.mxu1 %v8708_v10  ;;  %v8716_v46 = vpack.c.bf16 %v531_v39, %v339_v38  ;;  %v1387_v10 = vrot.slane %v1373_v2, %v9755_v5  ;;  %v538_v60 = vld [vmem:[%s9744_s12 + $0x820] sm:$0x3]  ;;  %v541_v2 = vld [vmem:[%s9744_s12 + $0x838] sm:$0x3] }
 0x142   : > { %8899 = vmatpush1.bf16.xpose.msra.mxu0 %v8898_v7  ;;  %7032 = vmatprep.mubr.f32.mxu0 %v1355_v9  ;;  %v979_v7 = vrot.slane %v965_v63, %v9755_v5  ;;  %v628_v9 = vld [vmem:[%s9744_s12 + $0xaf0] sm:$0x3]  ;;  %v634_v63 = vld [vmem:[%s9744_s12 + $0xb20] sm:$0x3] }
 0x143   : > { %8901 = vmatprep.subr.bf16.mxu0 %v8900_v12  ;;  %v535_v12 = vld [vmem:[%s9744_s12 + $0x808] sm:$0x3]  ;;  %v1389_v18 = vcombine.high %v1387_v10, %v1387_v10 }
 0x144   : > { %v981_v17 = vcombine.high %v979_v7, %v979_v7 }
 0x147   : > { %3673 = vmatmul.mubr.f32.vlgmr.msra.gmra.mrb[0].mxu1 %v945_v61  ;;  %v8910_v61 = vpack.c.bf16 %v626_v54, %v434_v53 }
 0x148   : > { %8711 = vmatpush1.bf16.xpose.msra.mxu1 %v8710_v22  ;;  %3742 = vmatprep.mubr.f32.mxu1 %v963_v26  ;;  %v270_v22 = vld [vmem:[%s9738_s21 + $0x140] sm:$0xff] }
 0x149   : > { %7033 = vmatmul.mubr.f32.vlgmr.msra.gmra.mrb[0].mxu0 %v1353_v0  ;;  %8713 = vmatprep.subr.bf16.mxu1 %v8712_v29  ;;  %v1388_v0 = vcombine.high %v1380_v55, %v1380_v55  ;;  %v438_v26 = vld [vmem:[%s9744_s12 + $0x500] sm:$0xff]  ;;  %v345_v29 = vld [vmem:[%s9744_s12 + $0x218] sm:$0xff]  ;;  %v1390_v39 = vcombine.high %v270_v22, %v270_v22 }
 0x14a   : > { %8903 = vmatpush1.bf16.xpose.msra.mxu0 %v8902_v25  ;;  %7102 = vmatprep.mubr.f32.mxu0 %v1371_v28  ;;  %v989_v25 = vrot.slane %v246_v20, %v9755_v5  ;;  %v1397_v28 = vrot.slane %v270_v22, %v9755_v5  ;;  %v8728_v38 = vpack.c.bf16 %v537_v30, %v345_v29  ;;  %v351_v20 = vld [vmem:[%s9744_s12 + $0x248] sm:$0xff]  ;;  %v248_v29 = vld [vmem:[%s9738_s21 + $0x90] sm:$0xff] }
 0x14b   : > { %8905 = vmatprep.subr.bf16.mxu0 %v8904_v31  ;;  %v8726_v31 = vpack.c.bf16 %v534_v24, %v342_v23  ;;  %v8738_v22 = vpack.c.bf16 %v540_v15, %v348_v14  ;;  %v447_v23 = vld [vmem:[%s9744_s12 + $0x548] sm:$0xff]  ;;  %v453_v14 = vld [vmem:[%s9744_s12 + $0x578] sm:$0xff] }
 0x14c   : > { %v997_v35 = vcombine.high %v989_v25, %v989_v25  ;;  %v639_v24 = vld [vmem:[%s9744_s12 + $0xb48] sm:$0x3]  ;;  %v645_v15 = vld [vmem:[%s9744_s12 + $0xb78] sm:$0x3] }
 0x14d   : > { %v8932_v30 = vpack.c.bf16 %v639_v24, %v447_v23  ;;  %v356_v23 = vld [vmem:[%s9744_s12 + $0x270] sm:$0xff] }
 0x14e   : > { %v548_v24 = vld [vmem:[%s9744_s12 + $0x870] sm:$0x3] }
 0x14f   : > { %3743 = vmatmul.mubr.f32.vlgmr.msra.gmra.mrb[0].mxu1 %v955_v16  ;;  %v8914_v16 = vpack.c.bf16 %v628_v9, %v436_v8  ;;  %v999_v9 = vcombine.high %v247_v56, %v247_v56 }
 0x150   : > { %8715 = vmatpush1.bf16.xpose.msra.mxu1 %v8714_v40  ;;  %3812 = vmatprep.mubr.f32.mxu1 %v964_v44  ;;  %v8920_v40 = vpack.c.bf16 %v633_v33, %v441_v32  ;;  %v440_v44 = vld [vmem:[%s9744_s12 + $0x510] sm:$0xff]  ;;  %v350_v32 = vld [vmem:[%s9744_s12 + $0x240] sm:$0xff] }
 0x151   : > { %7103 = vmatmul.mubr.f32.vlgmr.msra.gmra.mrb[0].mxu0 %v1363_v19  ;;  %8717 = vmatprep.subr.bf16.mxu1 %v8716_v46  ;;  %v8724_v19 = vpack.c.bf16 %v535_v12, %v343_v11  ;;  %v1404_v46 = vrot.slane %v1390_v39, %v9755_v5  ;;  %v542_v33 = vld [vmem:[%s9744_s12 + $0x840] sm:$0x3]  ;;  %v545_v39 = vld [vmem:[%s9744_s12 + $0x858] sm:$0x3] }
 0x152   : > { %8907 = vmatpush1.bf16.xpose.msra.mxu0 %v8906_v43  ;;  %7172 = vmatprep.mubr.f32.mxu0 %v1372_v45  ;;  %v996_v43 = vrot.slane %v982_v36, %v9755_v5  ;;  %v632_v45 = vld [vmem:[%s9744_s12 + $0xb10] sm:$0x3]  ;;  %v638_v36 = vld [vmem:[%s9744_s12 + $0xb40] sm:$0x3] }
 0x153   : > { %8909 = vmatprep.subr.bf16.mxu0 %v8908_v48  ;;  %v539_v48 = vld [vmem:[%s9744_s12 + $0x828] sm:$0x3]  ;;  %v1406_v54 = vcombine.high %v1404_v46, %v1404_v46 }
 0x154   : > { %v998_v53 = vcombine.high %v996_v43, %v996_v43 }
 0x157   : > { %3813 = vmatmul.mubr.f32.vlgmr.msra.gmra.mrb[0].mxu1 %v962_v34  ;;  %v8918_v34 = vpack.c.bf16 %v630_v27, %v438_v26 }
 0x158   : > { %8719 = vmatpush1.bf16.xpose.msra.mxu1 %v8718_v58  ;;  %3882 = vmatprep.mubr.f32.mxu1 %v980_v62  ;;  %v271_v58 = vld [vmem:[%s9738_s21 + $0x148] sm:$0xff]  ;;  %v442_v62 = vld [vmem:[%s9744_s12 + $0x520] sm:$0xff] }
 0x159   : > { %7173 = vmatmul.mubr.f32.vlgmr.msra.gmra.mrb[0].mxu0 %v1370_v37  ;;  %8721 = vmatprep.subr.bf16.mxu1 %v8720_v1  ;;  %v1405_v37 = vcombine.high %v1397_v28, %v1397_v28  ;;  %v349_v1 = vld [vmem:[%s9744_s12 + $0x238] sm:$0xff]  ;;  %v1407_v12 = vcombine.high %v271_v58, %v271_v58 }
 0x15a   : > { %8911 = vmatpush1.bf16.xpose.msra.mxu0 %v8910_v61  ;;  %7242 = vmatprep.mubr.f32.mxu0 %v1388_v0  ;;  %v1006_v61 = vrot.slane %v247_v56, %v9755_v5  ;;  %v1414_v0 = vrot.slane %v271_v58, %v9755_v5  ;;  %v8736_v11 = vpack.c.bf16 %v541_v2, %v349_v1  ;;  %v355_v56 = vld [vmem:[%s9744_s12 + $0x268] sm:$0xff]  ;;  %v249_v1 = vld [vmem:[%s9738_s21 + $0x98] sm:$0xff] }
 0x15b   : > { %8913 = vmatprep.subr.bf16.mxu0 %v8912_v3  ;;  %v8734_v3 = vpack.c.bf16 %v538_v60, %v346_v59  ;;  %v8746_v58 = vpack.c.bf16 %v544_v51, %v352_v50  ;;  %v451_v59 = vld [vmem:[%s9744_s12 + $0x568] sm:$0xff]  ;;  %v457_v50 = vld [vmem:[%s9744_s12 + $0x598] sm:$0xff] }
 0x15c   : > { %v1014_v8 = vcombine.high %v1006_v61, %v1006_v61  ;;  %v643_v60 = vld [vmem:[%s9744_s12 + $0xb68] sm:$0x3]  ;;  %v649_v51 = vld [vmem:[%s9744_s12 + $0xb98] sm:$0x3] }
 0x15d   : > { %v8940_v2 = vpack.c.bf16 %v643_v60, %v451_v59  ;;  %v360_v59 = vld [vmem:[%s9744_s12 + $0x290] sm:$0xff] }
 0x15e   : > { %v552_v60 = vld [vmem:[%s9744_s12 + $0x890] sm:$0x3] }
 0x15f   : > { %3883 = vmatmul.mubr.f32.vlgmr.msra.gmra.mrb[0].mxu1 %v972_v52  ;;  %v8922_v52 = vpack.c.bf16 %v632_v45, %v440_v44  ;;  %v1016_v45 = vcombine.high %v248_v29, %v248_v29 }
 0x160   : > { %8723 = vmatpush1.bf16.xpose.msra.mxu1 %v8722_v13  ;;  %3952 = vmatprep.mubr.f32.mxu1 %v981_v17  ;;  %v8928_v13 = vpack.c.bf16 %v637_v6, %v445_v4  ;;  %v444_v17 = vld [vmem:[%s9744_s12 + $0x530] sm:$0xff]  ;;  %v354_v4 = vld [vmem:[%s9744_s12 + $0x260] sm:$0xff] }
 0x161   : > { %7243 = vmatmul.mubr.f32.vlgmr.msra.gmra.mrb[0].mxu0 %v1380_v55  ;;  %8725 = vmatprep.subr.bf16.mxu1 %v8724_v19  ;;  %v8732_v55 = vpack.c.bf16 %v539_v48, %v347_v47  ;;  %v1421_v19 = vrot.slane %v1407_v12, %v9755_v5  ;;  %v546_v6 = vld [vmem:[%s9744_s12 + $0x860] sm:$0x3]  ;;  %v549_v12 = vld [vmem:[%s9744_s12 + $0x878] sm:$0x3] }
 0x162   : > { %8915 = vmatpush1.bf16.xpose.msra.mxu0 %v8914_v16  ;;  %7312 = vmatprep.mubr.f32.mxu0 %v1389_v18  ;;  %v1013_v16 = vrot.slane %v999_v9, %v9755_v5  ;;  %v636_v18 = vld [vmem:[%s9744_s12 + $0xb30] sm:$0x3]  ;;  %v642_v9 = vld [vmem:[%s9744_s12 + $0xb60] sm:$0x3] }
 0x163   : > { %8917 = vmatprep.subr.bf16.mxu0 %v8916_v21  ;;  %v543_v21 = vld [vmem:[%s9744_s12 + $0x848] sm:$0x3]  ;;  %v1423_v27 = vcombine.high %v1421_v19, %v1421_v19 }
 0x164   : > { %v1015_v26 = vcombine.high %v1013_v16, %v1013_v16 }
 0x167   : > { %3953 = vmatmul.mubr.f32.vlgmr.msra.gmra.mrb[0].mxu1 %v979_v7  ;;  %v8926_v7 = vpack.c.bf16 %v634_v63, %v442_v62 }
 0x168   : > { %8727 = vmatpush1.bf16.xpose.msra.mxu1 %v8726_v31  ;;  %4022 = vmatprep.mubr.f32.mxu1 %v997_v35  ;;  %v272_v31 = vld [vmem:[%s9738_s21 + $0x150] sm:$0xff]  ;;  %v446_v35 = vld [vmem:[%s9744_s12 + $0x540] sm:$0xff] }
 0x169   : > { %7313 = vmatmul.mubr.f32.vlgmr.msra.gmra.mrb[0].mxu0 %v1387_v10  ;;  %8729 = vmatprep.subr.bf16.mxu1 %v8728_v38  ;;  %v1422_v10 = vcombine.high %v1414_v0, %v1414_v0  ;;  %v353_v38 = vld [vmem:[%s9744_s12 + $0x258] sm:$0xff]  ;;  %v1424_v48 = vcombine.high %v272_v31, %v272_v31 }
 0x16a   : > { %8919 = vmatpush1.bf16.xpose.msra.mxu0 %v8918_v34  ;;  %7382 = vmatprep.mubr.f32.mxu0 %v1405_v37  ;;  %v1023_v34 = vrot.slane %v248_v29, %v9755_v5  ;;  %v1431_v37 = vrot.slane %v272_v31, %v9755_v5  ;;  %v8744_v47 = vpack.c.bf16 %v545_v39, %v353_v38  ;;  %v359_v29 = vld [vmem:[%s9744_s12 + $0x288] sm:$0xff]  ;;  %v250_v38 = vld [vmem:[%s9738_s21 + $0xa0] sm:$0xff] }
 0x16b   : > { %8921 = vmatprep.subr.bf16.mxu0 %v8920_v40  ;;  %v8742_v40 = vpack.c.bf16 %v542_v33, %v350_v32  ;;  %v8754_v31 = vpack.c.bf16 %v548_v24, %v356_v23  ;;  %v455_v32 = vld [vmem:[%s9744_s12 + $0x588] sm:$0xff]  ;;  %v461_v23 = vld [vmem:[%s9744_s12 + $0x5b8] sm:$0xff] }
 0x16c   : > { %v1031_v44 = vcombine.high %v1023_v34, %v1023_v34  ;;  %v647_v33 = vld [vmem:[%s9744_s12 + $0xb88] sm:$0x3]  ;;  %v653_v24 = vld [vmem:[%s9744_s12 + $0xbb8] sm:$0x3] }
 0x16d   : > { %v8948_v39 = vpack.c.bf16 %v647_v33, %v455_v32  ;;  %v364_v32 = vld [vmem:[%s9744_s12 + $0x2b0] sm:$0xff] }
 0x16e   : > { %v556_v33 = vld [vmem:[%s9744_s12 + $0x8b0] sm:$0x3] }
 0x16f   : > { %4023 = vmatmul.mubr.f32.vlgmr.msra.gmra.mrb[0].mxu1 %v989_v25  ;;  %v8930_v25 = vpack.c.bf16 %v636_v18, %v444_v17  ;;  %v1033_v18 = vcombine.high %v249_v1, %v249_v1 }
 0x170   : > { %8731 = vmatpush1.bf16.xpose.msra.mxu1 %v8730_v49  ;;  %4092 = vmatprep.mubr.f32.mxu1 %v998_v53  ;;  %v8936_v49 = vpack.c.bf16 %v641_v42, %v449_v41  ;;  %v448_v53 = vld [vmem:[%s9744_s12 + $0x550] sm:$0xff]  ;;  %v358_v41 = vld [vmem:[%s9744_s12 + $0x280] sm:$0xff] }
 0x171   : > { %7383 = vmatmul.mubr.f32.vlgmr.msra.gmra.mrb[0].mxu0 %v1397_v28  ;;  %8733 = vmatprep.subr.bf16.mxu1 %v8732_v55  ;;  %v8740_v28 = vpack.c.bf16 %v543_v21, %v351_v20  ;;  %v1438_v55 = vrot.slane %v1424_v48, %v9755_v5  ;;  %v550_v42 = vld [vmem:[%s9744_s12 + $0x880] sm:$0x3]  ;;  %v553_v48 = vld [vmem:[%s9744_s12 + $0x898] sm:$0x3] }
 0x172   : > { %8923 = vmatpush1.bf16.xpose.msra.mxu0 %v8922_v52  ;;  %7452 = vmatprep.mubr.f32.mxu0 %v1406_v54  ;;  %v1030_v52 = vrot.slane %v1016_v45, %v9755_v5  ;;  %v640_v54 = vld [vmem:[%s9744_s12 + $0xb50] sm:$0x3]  ;;  %v646_v45 = vld [vmem:[%s9744_s12 + $0xb80] sm:$0x3] }
 0x173   : > { %8925 = vmatprep.subr.bf16.mxu0 %v8924_v57  ;;  %v547_v57 = vld [vmem:[%s9744_s12 + $0x868] sm:$0x3]  ;;  %v1440_v63 = vcombine.high %v1438_v55, %v1438_v55 }
 0x174   : > { %v1032_v62 = vcombine.high %v1030_v52, %v1030_v52 }
 0x177   : > { %4093 = vmatmul.mubr.f32.vlgmr.msra.gmra.mrb[0].mxu1 %v996_v43  ;;  %v8934_v43 = vpack.c.bf16 %v638_v36, %v446_v35 }
 0x178   : > { %8735 = vmatpush1.bf16.xpose.msra.mxu1 %v8734_v3  ;;  %4162 = vmatprep.mubr.f32.mxu1 %v1014_v8  ;;  %v273_v3 = vld [vmem:[%s9738_s21 + $0x158] sm:$0xff]  ;;  %v450_v8 = vld [vmem:[%s9744_s12 + $0x560] sm:$0xff] }
 0x179   : > { %7453 = vmatmul.mubr.f32.vlgmr.msra.gmra.mrb[0].mxu0 %v1404_v46  ;;  %8737 = vmatprep.subr.bf16.mxu1 %v8736_v11  ;;  %v1439_v46 = vcombine.high %v1431_v37, %v1431_v37  ;;  %v357_v11 = vld [vmem:[%s9744_s12 + $0x278] sm:$0xff]  ;;  %v1441_v21 = vcombine.high %v273_v3, %v273_v3 }
 0x17a   : > { %8927 = vmatpush1.bf16.xpose.msra.mxu0 %v8926_v7  ;;  %7522 = vmatprep.mubr.f32.mxu0 %v1422_v10  ;;  %v1040_v7 = vrot.slane %v249_v1, %v9755_v5  ;;  %v1448_v10 = vrot.slane %v273_v3, %v9755_v5  ;;  %v8752_v20 = vpack.c.bf16 %v549_v12, %v357_v11  ;;  %v363_v1 = vld [vmem:[%s9744_s12 + $0x2a8] sm:$0xff] }
 0x17b   : > { %8929 = vmatprep.subr.bf16.mxu0 %v8928_v13  ;;  %v8750_v13 = vpack.c.bf16 %v546_v6, %v354_v4  ;;  %v8762_v3 = vpack.c.bf16 %v552_v60, %v360_v59  ;;  %v459_v4 = vld [vmem:[%s9744_s12 + $0x5a8] sm:$0xff]  ;;  %v465_v59 = vld [vmem:[%s9744_s12 + $0x5d8] sm:$0xff] }
 0x17c   : > { %v1048_v17 = vcombine.high %v1040_v7, %v1040_v7  ;;  %v651_v6 = vld [vmem:[%s9744_s12 + $0xba8] sm:$0x3]  ;;  %v657_v60 = vld [vmem:[%s9744_s12 + $0xbd8] sm:$0x3] }
 0x17d   : > { %v251_v11 = vld [vmem:[%s9738_s21 + $0xa8] sm:$0xff]  ;;  %v8956_v12 = vpack.c.bf16 %v651_v6, %v459_v4  ;;  %v368_v4 = vld [vmem:[%s9744_s12 + $0x2d0] sm:$0xff] }
 0x17e   : > { %v560_v6 = vld [vmem:[%s9744_s12 + $0x8d0] sm:$0x3] }
 0x17f   : > { %4163 = vmatmul.mubr.f32.vlgmr.msra.gmra.mrb[0].mxu1 %v1006_v61  ;;  %v8938_v61 = vpack.c.bf16 %v640_v54, %v448_v53  ;;  %v1050_v54 = vcombine.high %v250_v38, %v250_v38 }
 0x180   : > { %8739 = vmatpush1.bf16.xpose.msra.mxu1 %v8738_v22  ;;  %4232 = vmatprep.mubr.f32.mxu1 %v1015_v26  ;;  %v8944_v22 = vpack.c.bf16 %v645_v15, %v453_v14  ;;  %v452_v26 = vld [vmem:[%s9744_s12 + $0x570] sm:$0xff]  ;;  %v362_v14 = vld [vmem:[%s9744_s12 + $0x2a0] sm:$0xff] }
 0x181   : > { %7523 = vmatmul.mubr.f32.vlgmr.msra.gmra.mrb[0].mxu0 %v1414_v0  ;;  %8741 = vmatprep.subr.bf16.mxu1 %v8740_v28  ;;  %v8748_v0 = vpack.c.bf16 %v547_v57, %v355_v56  ;;  %v1455_v28 = vrot.slane %v1441_v21, %v9755_v5  ;;  %v554_v15 = vld [vmem:[%s9744_s12 + $0x8a0] sm:$0x3]  ;;  %v557_v21 = vld [vmem:[%s9744_s12 + $0x8b8] sm:$0x3] }
 0x182   : > { %8931 = vmatpush1.bf16.xpose.msra.mxu0 %v8930_v25  ;;  %7592 = vmatprep.mubr.f32.mxu0 %v1423_v27  ;;  %v1047_v25 = vrot.slane %v1033_v18, %v9755_v5  ;;  %v644_v27 = vld [vmem:[%s9744_s12 + $0xb70] sm:$0x3]  ;;  %v650_v18 = vld [vmem:[%s9744_s12 + $0xba0] sm:$0x3] }
 0x183   : > { %8933 = vmatprep.subr.bf16.mxu0 %v8932_v30  ;;  %v551_v30 = vld [vmem:[%s9744_s12 + $0x888] sm:$0x3]  ;;  %v1457_v36 = vcombine.high %v1455_v28, %v1455_v28 }
 0x184   : > { %v1049_v35 = vcombine.high %v1047_v25, %v1047_v25 }
 0x187   : > { %4233 = vmatmul.mubr.f32.vlgmr.msra.gmra.mrb[0].mxu1 %v1013_v16  ;;  %v8942_v16 = vpack.c.bf16 %v642_v9, %v450_v8 }
 0x188   : > { %8743 = vmatpush1.bf16.xpose.msra.mxu1 %v8742_v40  ;;  %4302 = vmatprep.mubr.f32.mxu1 %v1031_v44  ;;  %v274_v40 = vld [vmem:[%s9738_s21 + $0x160] sm:$0xff] }
 0x189   : > { %7593 = vmatmul.mubr.f32.vlgmr.msra.gmra.mrb[0].mxu0 %v1421_v19  ;;  %8745 = vmatprep.subr.bf16.mxu1 %v8744_v47  ;;  %v1456_v19 = vcombine.high %v1448_v10, %v1448_v10  ;;  %v454_v44 = vld [vmem:[%s9744_s12 + $0x580] sm:$0xff]  ;;  %v361_v47 = vld [vmem:[%s9744_s12 + $0x298] sm:$0xff]  ;;  %v1458_v57 = vcombine.high %v274_v40, %v274_v40 }
 0x18a   : > { %8935 = vmatpush1.bf16.xpose.msra.mxu0 %v8934_v43  ;;  %7662 = vmatprep.mubr.f32.mxu0 %v1439_v46  ;;  %v1057_v43 = vrot.slane %v250_v38, %v9755_v5  ;;  %v1465_v46 = vrot.slane %v274_v40, %v9755_v5  ;;  %v8760_v56 = vpack.c.bf16 %v553_v48, %v361_v47  ;;  %v367_v38 = vld [vmem:[%s9744_s12 + $0x2c8] sm:$0xff]  ;;  %v252_v47 = vld [vmem:[%s9738_s21 + $0xb0] sm:$0xff] }
 0x18b   : > { %8937 = vmatprep.subr.bf16.mxu0 %v8936_v49  ;;  %v8758_v49 = vpack.c.bf16 %v550_v42, %v358_v41  ;;  %v8770_v40 = vpack.c.bf16 %v556_v33, %v364_v32  ;;  %v463_v41 = vld [vmem:[%s9744_s12 + $0x5c8] sm:$0xff]  ;;  %v469_v32 = vld [vmem:[%s9744_s12 + $0x5f8] sm:$0xff] }
 0x18c   : > { %v1065_v53 = vcombine.high %v1057_v43, %v1057_v43  ;;  %v655_v42 = vld [vmem:[%s9744_s12 + $0xbc8] sm:$0x3]  ;;  %v661_v33 = vld [vmem:[%s9744_s12 + $0xbf8] sm:$0x3] }
 0x18d   : > { %v8964_v48 = vpack.c.bf16 %v655_v42, %v463_v41  ;;  %v372_v41 = vld [vmem:[%s9744_s12 + $0x2f0] sm:$0xff] }
 0x18e   : > { %v564_v42 = vld [vmem:[%s9744_s12 + $0x8f0] sm:$0x3] }
 0x18f   : > { %4303 = vmatmul.mubr.f32.vlgmr.msra.gmra.mrb[0].mxu1 %v1023_v34  ;;  %v8946_v34 = vpack.c.bf16 %v644_v27, %v452_v26  ;;  %v1067_v27 = vcombine.high %v251_v11, %v251_v11 }
 0x190   : > { %8747 = vmatpush1.bf16.xpose.msra.mxu1 %v8746_v58  ;;  %4372 = vmatprep.mubr.f32.mxu1 %v1032_v62  ;;  %v8952_v58 = vpack.c.bf16 %v649_v51, %v457_v50  ;;  %v456_v62 = vld [vmem:[%s9744_s12 + $0x590] sm:$0xff]  ;;  %v366_v50 = vld [vmem:[%s9744_s12 + $0x2c0] sm:$0xff] }
 0x191   : > { %7663 = vmatmul.mubr.f32.vlgmr.msra.gmra.mrb[0].mxu0 %v1431_v37  ;;  %8749 = vmatprep.subr.bf16.mxu1 %v8748_v0  ;;  %v8756_v37 = vpack.c.bf16 %v551_v30, %v359_v29  ;;  %v1472_v0 = vrot.slane %v1458_v57, %v9755_v5  ;;  %v558_v51 = vld [vmem:[%s9744_s12 + $0x8c0] sm:$0x3]  ;;  %v561_v57 = vld [vmem:[%s9744_s12 + $0x8d8] sm:$0x3] }
 0x192   : > { %8939 = vmatpush1.bf16.xpose.msra.mxu0 %v8938_v61  ;;  %7732 = vmatprep.mubr.f32.mxu0 %v1440_v63  ;;  %v1064_v61 = vrot.slane %v1050_v54, %v9755_v5  ;;  %v648_v63 = vld [vmem:[%s9744_s12 + $0xb90] sm:$0x3]  ;;  %v654_v54 = vld [vmem:[%s9744_s12 + $0xbc0] sm:$0x3] }
 0x193   : > { %8941 = vmatprep.subr.bf16.mxu0 %v8940_v2  ;;  %v555_v2 = vld [vmem:[%s9744_s12 + $0x8a8] sm:$0x3]  ;;  %v1474_v9 = vcombine.high %v1472_v0, %v1472_v0 }
 0x194   : > { %v1066_v8 = vcombine.high %v1064_v61, %v1064_v61 }
 0x197   : > { %4373 = vmatmul.mubr.f32.vlgmr.msra.gmra.mrb[0].mxu1 %v1030_v52  ;;  %v8950_v52 = vpack.c.bf16 %v646_v45, %v454_v44 }
 0x198   : > { %8751 = vmatpush1.bf16.xpose.msra.mxu1 %v8750_v13  ;;  %4442 = vmatprep.mubr.f32.mxu1 %v1048_v17  ;;  %v275_v13 = vld [vmem:[%s9738_s21 + $0x168] sm:$0xff]  ;;  %v458_v17 = vld [vmem:[%s9744_s12 + $0x5a0] sm:$0xff] }
 0x199   : > { %7733 = vmatmul.mubr.f32.vlgmr.msra.gmra.mrb[0].mxu0 %v1438_v55  ;;  %8753 = vmatprep.subr.bf16.mxu1 %v8752_v20  ;;  %v1473_v55 = vcombine.high %v1465_v46, %v1465_v46  ;;  %v365_v20 = vld [vmem:[%s9744_s12 + $0x2b8] sm:$0xff]  ;;  %v1475_v30 = vcombine.high %v275_v13, %v275_v13 }
 0x19a   : > { %8943 = vmatpush1.bf16.xpose.msra.mxu0 %v8942_v16  ;;  %7802 = vmatprep.mubr.f32.mxu0 %v1456_v19  ;;  %v1074_v16 = vrot.slane %v251_v11, %v9755_v5  ;;  %v1482_v19 = vrot.slane %v275_v13, %v9755_v5  ;;  %v8768_v29 = vpack.c.bf16 %v557_v21, %v365_v20  ;;  %v371_v11 = vld [vmem:[%s9744_s12 + $0x2e8] sm:$0xff]  ;;  %v253_v20 = vld [vmem:[%s9738_s21 + $0xb8] sm:$0xff] }
 0x19b   : > { %8945 = vmatprep.subr.bf16.mxu0 %v8944_v22  ;;  %v8766_v22 = vpack.c.bf16 %v554_v15, %v362_v14  ;;  %v8778_v13 = vpack.c.bf16 %v560_v6, %v368_v4  ;;  %v467_v14 = vld [vmem:[%s9744_s12 + $0x5e8] sm:$0xff] }
 0x19c   : > { %v1082_v26 = vcombine.high %v1074_v16, %v1074_v16  ;;  %v659_v15 = vld [vmem:[%s9744_s12 + $0xbe8] sm:$0x3] }
 0x19d   : > { %v8972_v21 = vpack.c.bf16 %v659_v15, %v467_v14 }
 0x19f   : > { %4443 = vmatmul.mubr.f32.vlgmr.msra.gmra.mrb[0].mxu1 %v1040_v7  ;;  %v8954_v7 = vpack.c.bf16 %v648_v63, %v456_v62  ;;  %v1084_v63 = vcombine.high %v252_v47, %v252_v47 }
 0x1a0   : > { %8755 = vmatpush1.bf16.xpose.msra.mxu1 %v8754_v31  ;;  %4512 = vmatprep.mubr.f32.mxu1 %v1049_v35  ;;  %v8960_v31 = vpack.c.bf16 %v653_v24, %v461_v23  ;;  %v460_v35 = vld [vmem:[%s9744_s12 + $0x5b0] sm:$0xff]  ;;  %v370_v23 = vld [vmem:[%s9744_s12 + $0x2e0] sm:$0xff] }
 0x1a1   : > { %7803 = vmatmul.mubr.f32.vlgmr.msra.gmra.mrb[0].mxu0 %v1448_v10  ;;  %8757 = vmatprep.subr.bf16.mxu1 %v8756_v37  ;;  %v8764_v10 = vpack.c.bf16 %v555_v2, %v363_v1  ;;  %v1489_v37 = vrot.slane %v1475_v30, %v9755_v5  ;;  %v562_v24 = vld [vmem:[%s9744_s12 + $0x8e0] sm:$0x3]  ;;  %v565_v30 = vld [vmem:[%s9744_s12 + $0x8f8] sm:$0x3] }
 0x1a2   : > { %8947 = vmatpush1.bf16.xpose.msra.mxu0 %v8946_v34  ;;  %7872 = vmatprep.mubr.f32.mxu0 %v1457_v36  ;;  %v1081_v34 = vrot.slane %v1067_v27, %v9755_v5  ;;  %v652_v36 = vld [vmem:[%s9744_s12 + $0xbb0] sm:$0x3]  ;;  %v658_v27 = vld [vmem:[%s9744_s12 + $0xbe0] sm:$0x3] }
 0x1a3   : > { %8949 = vmatprep.subr.bf16.mxu0 %v8948_v39  ;;  %v559_v39 = vld [vmem:[%s9744_s12 + $0x8c8] sm:$0x3]  ;;  %v1491_v45 = vcombine.high %v1489_v37, %v1489_v37 }
 0x1a4   : > { %v1083_v44 = vcombine.high %v1081_v34, %v1081_v34 }
 0x1a7   : > { %4513 = vmatmul.mubr.f32.vlgmr.msra.gmra.mrb[0].mxu1 %v1047_v25  ;;  %v8958_v25 = vpack.c.bf16 %v650_v18, %v458_v17 }
 0x1a8   : > { %8759 = vmatpush1.bf16.xpose.msra.mxu1 %v8758_v49  ;;  %4582 = vmatprep.mubr.f32.mxu1 %v1065_v53  ;;  %v276_v49 = vld [vmem:[%s9738_s21 + $0x170] sm:$0xff]  ;;  %v462_v53 = vld [vmem:[%s9744_s12 + $0x5c0] sm:$0xff] }
 0x1a9   : > { %7873 = vmatmul.mubr.f32.vlgmr.msra.gmra.mrb[0].mxu0 %v1455_v28  ;;  %8761 = vmatprep.subr.bf16.mxu1 %v8760_v56  ;;  %v1490_v28 = vcombine.high %v1482_v19, %v1482_v19  ;;  %v369_v56 = vld [vmem:[%s9744_s12 + $0x2d8] sm:$0xff]  ;;  %v1492_v2 = vcombine.high %v276_v49, %v276_v49 }
 0x1aa   : > { %8951 = vmatpush1.bf16.xpose.msra.mxu0 %v8950_v52  ;;  %7942 = vmatprep.mubr.f32.mxu0 %v1473_v55  ;;  %v1091_v52 = vrot.slane %v252_v47, %v9755_v5  ;;  %v1499_v55 = vrot.slane %v276_v49, %v9755_v5  ;;  %v8776_v1 = vpack.c.bf16 %v561_v57, %v369_v56 }
 0x1ab   : > { %8953 = vmatprep.subr.bf16.mxu0 %v8952_v58  ;;  %v8774_v58 = vpack.c.bf16 %v558_v51, %v366_v50  ;;  %v8786_v47 = vpack.c.bf16 %v564_v42, %v372_v41 }
 0x1ac   : > { %v1099_v62 = vcombine.high %v1091_v52, %v1091_v52 }
 0x1af   : > { %4583 = vmatmul.mubr.f32.vlgmr.msra.gmra.mrb[0].mxu1 %v1057_v43  ;;  %v8962_v43 = vpack.c.bf16 %v652_v36, %v460_v35  ;;  %v1101_v36 = vcombine.high %v253_v20, %v253_v20 }
 0x1b0   : > { %8763 = vmatpush1.bf16.xpose.msra.mxu1 %v8762_v3  ;;  %4652 = vmatprep.mubr.f32.mxu1 %v1066_v8  ;;  %v8968_v3 = vpack.c.bf16 %v657_v60, %v465_v59  ;;  %v464_v8 = vld [vmem:[%s9744_s12 + $0x5d0] sm:$0xff] }
 0x1b1   : > { %7943 = vmatmul.mubr.f32.vlgmr.msra.gmra.mrb[0].mxu0 %v1465_v46  ;;  %8765 = vmatprep.subr.bf16.mxu1 %v8764_v10  ;;  %v8772_v46 = vpack.c.bf16 %v559_v39, %v367_v38  ;;  %v1506_v10 = vrot.slane %v1492_v2, %v9755_v5 }
 0x1b2   : > { %8955 = vmatpush1.bf16.xpose.msra.mxu0 %v8954_v7  ;;  %8012 = vmatprep.mubr.f32.mxu0 %v1474_v9  ;;  %v1098_v7 = vrot.slane %v1084_v63, %v9755_v5  ;;  %v656_v9 = vld [vmem:[%s9744_s12 + $0xbd0] sm:$0x3] }
 0x1b3   : > { %8957 = vmatprep.subr.bf16.mxu0 %v8956_v12  ;;  %v563_v12 = vld [vmem:[%s9744_s12 + $0x8e8] sm:$0x3]  ;;  %v1508_v18 = vcombine.high %v1506_v10, %v1506_v10 }
 0x1b4   : > { %v1100_v17 = vcombine.high %v1098_v7, %v1098_v7 }
 0x1b7   : > { %4653 = vmatmul.mubr.f32.vlgmr.msra.gmra.mrb[0].mxu1 %v1064_v61  ;;  %v8966_v61 = vpack.c.bf16 %v654_v54, %v462_v53 }
 0x1b8   : > { %8767 = vmatpush1.bf16.xpose.msra.mxu1 %v8766_v22  ;;  %4722 = vmatprep.mubr.f32.mxu1 %v1082_v26  ;;  %v277_v22 = vld [vmem:[%s9738_s21 + $0x178] sm:$0xff]  ;;  %v466_v26 = vld [vmem:[%s9744_s12 + $0x5e0] sm:$0xff] }
 0x1b9   : > { %8013 = vmatmul.mubr.f32.vlgmr.msra.gmra.mrb[0].mxu0 %v1472_v0  ;;  %8769 = vmatprep.subr.bf16.mxu1 %v8768_v29  ;;  %v1507_v0 = vcombine.high %v1499_v55, %v1499_v55  ;;  %v373_v29 = vld [vmem:[%s9744_s12 + $0x2f8] sm:$0xff]  ;;  %v1509_v39 = vcombine.high %v277_v22, %v277_v22 }
 0x1ba   : > { %8959 = vmatpush1.bf16.xpose.msra.mxu0 %v8958_v25  ;;  %8082 = vmatprep.mubr.f32.mxu0 %v1490_v28  ;;  %v1108_v25 = vrot.slane %v253_v20, %v9755_v5  ;;  %v1516_v28 = vrot.slane %v277_v22, %v9755_v5  ;;  %v8784_v38 = vpack.c.bf16 %v565_v30, %v373_v29 }
 0x1bb   : > { %8961 = vmatprep.subr.bf16.mxu0 %v8960_v31  ;;  %v8782_v31 = vpack.c.bf16 %v562_v24, %v370_v23 }
 0x1bc   : > { %v1116_v35 = vcombine.high %v1108_v25, %v1108_v25 }
 0x1bf   : > { %4723 = vmatmul.mubr.f32.vlgmr.msra.gmra.mrb[0].mxu1 %v1074_v16  ;;  %v8970_v16 = vpack.c.bf16 %v656_v9, %v464_v8 }
 0x1c0   : > { %8771 = vmatpush1.bf16.xpose.msra.mxu1 %v8770_v40  ;;  %4792 = vmatprep.mubr.f32.mxu1 %v1083_v44  ;;  %v8976_v40 = vpack.c.bf16 %v661_v33, %v469_v32  ;;  %v468_v44 = vld [vmem:[%s9744_s12 + $0x5f0] sm:$0xff] }
 0x1c1   : > { %8083 = vmatmul.mubr.f32.vlgmr.msra.gmra.mrb[0].mxu0 %v1482_v19  ;;  %8773 = vmatprep.subr.bf16.mxu1 %v8772_v46  ;;  %v8780_v19 = vpack.c.bf16 %v563_v12, %v371_v11  ;;  %v1523_v46 = vrot.slane %v1509_v39, %v9755_v5 }
 0x1c2   : > { %8963 = vmatpush1.bf16.xpose.msra.mxu0 %v8962_v43  ;;  %8152 = vmatprep.mubr.f32.mxu0 %v1491_v45  ;;  %v1115_v43 = vrot.slane %v1101_v36, %v9755_v5  ;;  %v660_v45 = vld [vmem:[%s9744_s12 + $0xbf0] sm:$0x3] }
 0x1c3   : > { %8965 = vmatprep.subr.bf16.mxu0 %v8964_v48  ;;  %v8978_v48 = vpack.c.bf16 %v660_v45, %v468_v44  ;;  %v1525_v50 = vcombine.high %v1523_v46, %v1523_v46 }
 0x1c4   : > { %v1117_v49 = vcombine.high %v1115_v43, %v1115_v43 }
 0x1c7   : > { %4793 = vmatmul.mubr.f32.vlgmr.msra.gmra.mrb[0].mxu1 %v1081_v34  ;;  %v8974_v34 = vpack.c.bf16 %v658_v27, %v466_v26 }
 0x1c8   : > { %8775 = vmatpush1.bf16.xpose.msra.mxu1 %v8774_v58  ;;  %4862 = vmatprep.mubr.f32.mxu1 %v1099_v62 }
 0x1c9   : > { %8153 = vmatmul.mubr.f32.vlgmr.msra.gmra.mrb[0].mxu0 %v1489_v37  ;;  %8777 = vmatprep.subr.bf16.mxu1 %v8776_v1  ;;  %v1524_v37 = vcombine.high %v1516_v28, %v1516_v28 }
 0x1ca   : > { %8967 = vmatpush1.bf16.xpose.msra.mxu0 %v8966_v61  ;;  %8222 = vmatprep.mubr.f32.mxu0 %v1507_v0 }
 0x1cb   : > { %8969 = vmatprep.subr.bf16.mxu0 %v8968_v3 }
 0x1cf   : > { %4863 = vmatmul.mubr.f32.vlgmr.msra.gmra.mrb[0].mxu1 %v1091_v52 }
 0x1d0   : > { %8779 = vmatpush1.bf16.xpose.msra.mxu1 %v8778_v13  ;;  %4932 = vmatprep.mubr.f32.mxu1 %v1100_v17 }
 0x1d1   : > { %8223 = vmatmul.mubr.f32.vlgmr.msra.gmra.mrb[0].mxu0 %v1499_v55  ;;  %8781 = vmatprep.subr.bf16.mxu1 %v8780_v19 }
 0x1d2   : > { %8971 = vmatpush1.bf16.xpose.msra.mxu0 %v8970_v16  ;;  %8292 = vmatprep.mubr.f32.mxu0 %v1508_v18 }
 0x1d3   : > { %8973 = vmatprep.subr.bf16.mxu0 %v8972_v21 }
 0x1d7   : > { %4933 = vmatmul.mubr.f32.vlgmr.msra.gmra.mrb[0].mxu1 %v1098_v7 }
 0x1d8   : > { %8783 = vmatpush1.bf16.xpose.msra.mxu1 %v8782_v31  ;;  %5002 = vmatprep.mubr.f32.mxu1 %v1116_v35 }
 0x1d9   : > { %8293 = vmatmul.mubr.f32.vlgmr.msra.gmra.mrb[0].mxu0 %v1506_v10  ;;  %8785 = vmatprep.subr.bf16.mxu1 %v8784_v38 }
 0x1da   : > { %8975 = vmatpush1.bf16.xpose.msra.mxu0 %v8974_v34  ;;  %8362 = vmatprep.mubr.f32.mxu0 %v1524_v37 }
 0x1db   : > { %8977 = vmatprep.subr.bf16.mxu0 %v8976_v40 }
 0x1df   : > { %5003 = vmatmul.mubr.f32.vlgmr.msra.gmra.mrb[0].mxu1 %v1108_v25 }
 0x1e0   : > { %8787 = vmatpush1.bf16.xpose.msra.mxu1 %v8786_v47  ;;  %5072 = vmatprep.mubr.f32.mxu1 %v1117_v49 }
 0x1e1   : > { %8363 = vmatmul.mubr.f32.vlgmr.msra.gmra.mrb[0].mxu0 %v1516_v28 }
 0x1e2   : > { %8979 = vmatpush1.bf16.xpose.msra.mxu0 %v8978_v48  ;;  %8432 = vmatprep.mubr.f32.mxu0 %v1525_v50 }
 0x1e7   : > { %5073 = vmatmul.mubr.f32.vlgmr.msra.gmra.mrb[0].mxu1 %v1115_v43 }
 0x1e9   : > { %8433 = vmatmul.mubr.f32.vlgmr.msra.gmra.mrb[0].mxu0 %v1523_v46 }
 0x2b7   : > { %8441 = sbr.rel (%p8588_p3) target bundleno = 704 (0x2c0), region = 40 }
 0x2ba   : > { %v5074_v51 = vpop.f32.mrb[0].mxu1 }
 0x2bb   : > { %v5076_v53 = vpop.f32.mrb[1].mxu1 }
 0x2bc   : > { %v8434_v52 = vpop.f32.mrb[0].mxu0 }
 0x2bd   : > { %v8980_v54 = vadd.f32 %v8434_v52, %v5074_v51  ;;  %v8436_v55 = vpop.f32.mrb[1].mxu0 }
 0x2bf   : > { %8443 = vst.msk [vmem:[%s223_s28] sm:$0x3] %vm8442_vm0, %v8980_v54 }
 0x2c0 PF: > { %p8589_p5 = scmp.eq.s32.totalorder %s9502_s15, 0 }
 0x2c1   : > { %vm8450_vm1 = vcmask (!%p8589_p5), 74752  }
 0x2c2   : > { %8447 = sbr.rel (%p8589_p5) target bundleno = 714 (0x2ca), region = 44 }
 0x2c6   : > { %v8448_v5 = vld [vmem:[%s223_s28] sm:$0x3] (!%p8589_p5) }
 0x2c7   : > { %v8449_v56 = vadd.f32 (!%p8589_p5), %v8980_v54, %v8448_v5 }
 0x2c9   : > { %8451 = vst.msk [vmem:[%s223_s28] sm:$0x3] %vm8450_vm1, %v8449_v56 }
 0x2ca PF: > { %s8591_s29 = sshll.u32 %s9506_s16, 5  ;;  %s8466_s5 = sshll.u32 %s223_s28, 4  ;;  %s8467_s5 = int_to_ptr.vmem [resolvable:$true] %s8466_s5 }
 0x2cb   : > { %s10292_s25 = scalar_lea.hbm %s10352_s2, %s8591_s29  ;;  %s8453_s17 = scalar_lea.sflag [#allocation4], %s221_s30 }
 0x2cc   : > { %s9392_s15 = scalar_lea.vmem %s8467_s5, 32  ;;  %p10370_p1 = scmp.ne.s32.totalorder %s10365_s8, 0 }
 0x2cd   : > { %p9393_p12 = scmp.ne.s32.totalorder %s8467_s5, %s9392_s15  ;;  %s9526_s18 = smov [#allocation7]  }
 0x2ce   : > { %s9396_s27 = sshll.u32 %s9526_s18, 4  ;;  %s9397_s27 = int_to_ptr.vmem [resolvable:$false] %s9396_s27 }
 0x2cf   : > { %p9394_p10 = pnand %p9393_p12, %p10370_p1  ;;  %s9398_s22 = scalar_lea.vmem %s9397_s27, 64 }
 0x2d0   : > { %p9399_p8 = scmp.lt.s32.totalorder %s8467_s5, %s9397_s27  ;;  %p9400_p13 = scmp.lt.s32.totalorder %s9398_s22, %s9392_s15 }
 0x2d1   : > { %p9395_p11 = pneg %p9394_p10 }
 0x2d2   : > { %p9401_p2 = por %p9400_p13, %p9399_p8 }
 0x2d4   : > { %p9402_p0 = pnand %p9401_p2, %p9395_p11 }
 0x2d6   : > { %9405 = shalt.err (!%p9402_p0)
}
 0x2d7   : > { %s9406_s16 = scalar_lea.hbm %s10292_s25, 32  ;;  %s9410_s26 = scalar_lea.hbm %s10352_s2, 64 }
 0x2d8   : > { %p9407_p4 = scmp.ne.s32.totalorder %s10292_s25, %s9406_s16  ;;  %p9411_p7 = scmp.lt.u32.totalorder %s10292_s25, %s10352_s2 }
 0x2d9   : > { %p9412_p3 = scmp.lt.u32.totalorder %s9410_s26, %s9406_s16  ;;  %p9414_p12 = scmp.lt.u32.totalorder %s9406_s16, %s10292_s25 }
 0x2da   : > { %p9408_p6 = pnand %p9407_p4, %p10370_p1 }
 0x2db   : > { %p9413_p5 = por %p9412_p3, %p9411_p7 }
 0x2dc   : > { %p9409_p9 = pneg %p9408_p6 }
 0x2dd   : > { %p9415_p10 = por %p9414_p12, %p9413_p5 }
 0x2df   : > { %p9416_p11 = pnand %p9415_p10, %p9409_p9 }
 0x2e1   : > { %9419 = shalt.err (!%p9416_p11)
}
 0x2e2   : > { %9177 = dma.vmem_to_hbm [thread:$0]  (%p10370_p1), %s8467_s5, 32, %s10292_s25, %s8453_s17  }
 0x2e3 PF: > { %p9191_p8 = scmp.ge.s32.totalorder %s9518_s19, 2  ;;  %s8478_s4 = sand.u32 1, %s9478_s9  }
 0x2e4   : > { %p10371_p13 = scmp.ne.s32.totalorder %s10366_s24, 0  ;;  %s8479_s28 = scalar_lea.sflag [#allocation4], %s8478_s4 }
 0x2e6   : > { %p9187_p2 = pnand %p9191_p8, %p10371_p13 }
 0x2e8   : > { %9473 = dma.done.wait (!%p9187_p2), %s8479_s28, 32  }
 0x2e9   : > { %9475 = vsyncadd (!%p9187_p2), %s8479_s28, 4294967264  ;;  %s21_s19 = sadd.s32 1, %s9518_s19   ;;  %s10372_s15 = sld [smem:[#allocation11_spill]] }
 0x2ea   : > { %p18_p0 = scmp.ge.s32.totalorder %s21_s19, 10   ;;  %s10373_s16 = sld [smem:[#allocation12_spill]] }
 0x2eb   : > { %s10374_s17 = sld [smem:[#allocation13_spill]]  ;;  %s10375_s18 = sld [smem:[#allocation14_spill]] }
 0x2ec   : > { %s10376_s9 = smov %s9482_s10  ;;  %s10377_s10 = smov %s9486_s11 }
 0x2ed   : > { %s10378_s11 = smov %s9630_s6  ;;  %s10379_s12 = smov %s9494_s13 }
 0x2ee   : > { %s10380_s13 = smov %s9498_s14  ;;  %s10381_s14 = smov %s9633_s7 }
 0x2ef   :  { %20 = sbr.rel (!%p18_p0) target bundleno = 11 (0xb), region = 94 }
 0x2f6   :  { %8484 = vsyncpa [#allocation3], 1 }
 0x2f7   :  { %8486 = vsyncpa [#allocation3 + $0x1], 1 }
 0x2f8   :  { %8487 = vsyncpa [#allocation6], 1 }
 0x2f9   :  { %8489 = vsyncpa [#allocation6 + $0x1], 1 }
 0x2fa   :  { %8490 = vsyncpa [#allocation4], 1 }
 0x2fb   :  { %8492 = vsyncpa [#allocation4 + $0x1], 1 }

</bundles_post_ra>
